<compile_context>
chip_gen: v6e
topology: v6e:2x2x1
jax: 0.10.0
libtpu: 0.0.40
codegen_flags: <defaults>
</compile_context>

<pallas_src>
import functools

import jax
import jax.numpy as jnp
from jax.experimental import pallas as pl
from jax.experimental.pallas import tpu as pltpu


LN_EPS = 1e-5
NEG_INF = -1e30  # finite "masked" value: identical softmax result, NaN-safe
VOCAB_PAD = 128  # lane-dense vocab axis


def _layernorm(x, gamma, beta):
    """x: (N, C); gamma/beta: (1, C)."""
    mu = jnp.mean(x, axis=-1, keepdims=True)
    xc = x - mu
    var = jnp.mean(xc * xc, axis=-1, keepdims=True)
    return xc * jax.lax.rsqrt(var + LN_EPS) * gamma + beta


# ---------------------------------------------------------------------------
# Fused forward kernel: grid=(n_layer,), x carried in VMEM scratch.
# ---------------------------------------------------------------------------
def fused_forward_kernel(idx_ref, tok_tab_ref, pos_ref,
                         ln1g_ref, ln1b_ref, w_qkv_ref, w_proj_ref, b_proj_ref,
                         ln2g_ref, ln2b_ref, w_ff1_ref, b_ff1_ref,
                         w_ff2_ref, b_ff2_ref,
                         lnfg_ref, lnfb_ref, w_head_ref, b_head_ref,
                         logits_ref, x_scr,
                         *, batch, seq_len, num_heads, head_size):
    layer = pl.program_id(0)
    BT, C = x_scr.shape
    T = seq_len

    # ---- layer-0 prologue: token one-hot @ table (MXU) + position embedding.
    @pl.when(layer == 0)
    def _():
        ids_col = idx_ref[...]                                   # (BT, 1) int32
        Vp = tok_tab_ref.shape[0]
        vocab_iota = jax.lax.broadcasted_iota(jnp.int32, (BT, Vp), 1)
        onehot = (vocab_iota == ids_col).astype(jnp.float32)     # (BT, Vp)
        tok = jnp.dot(onehot, tok_tab_ref[...],
                      preferred_element_type=jnp.float32)        # (BT, C)
        pos = jnp.concatenate([pos_ref[...]] * batch, axis=0)    # (BT, C)
        x_scr[...] = tok + pos

    # ---- transformer block `layer`  (B folded into the M dimension) ------
    x = x_scr[...]                                               # (BT, C)

    # self-attention branch
    h = _layernorm(x, ln1g_ref[0], ln1b_ref[0])
    qkv = jnp.dot(h, w_qkv_ref[0], preferred_element_type=jnp.float32)  # (BT, 3C)
    q_all = qkv[:, :C]
    k_all = qkv[:, C:2 * C]
    v_all = qkv[:, 2 * C:3 * C]
    w_proj = w_proj_ref[0]                                       # (C, C)

    scale = head_size ** (-0.5)
    row = jax.lax.broadcasted_iota(jnp.int32, (T, T), 0)
    col = jax.lax.broadcasted_iota(jnp.int32, (T, T), 1)
    causal = col <= row

    att = jnp.zeros((BT, C), jnp.float32)
    for hh in range(num_heads):                 # static unrolled (small H)
        lo = hh * head_size
        hi = lo + head_size
        q_h = q_all[:, lo:hi]                   # (BT, D)
        k_h = k_all[:, lo:hi]
        v_h = v_all[:, lo:hi]
        ho_rows = []
        for b in range(batch):                  # per-batch (T,T) scores only
            sl = slice(b * T, (b + 1) * T)
            wei = jnp.dot(q_h[sl], k_h[sl].T,
                          preferred_element_type=jnp.float32) * scale
            wei = jnp.where(causal, wei, NEG_INF)
            wei = wei - jnp.max(wei, axis=-1, keepdims=True)
            p = jnp.exp(wei)
            p = p * pl.reciprocal(jnp.sum(p, axis=-1, keepdims=True), approx=True)
            # (attention dropout is identity in eval mode)
            ho_rows.append(jnp.dot(p, v_h[sl], preferred_element_type=jnp.float32))
        ho = jnp.concatenate(ho_rows, axis=0)   # (BT, D), sublane concat
        # accumulate directly into the output projection (no lane concat)
        att = att + jnp.dot(ho, w_proj[lo:hi, :],
                            preferred_element_type=jnp.float32)
    # (proj dropout is identity in eval mode)
    x = x + att + b_proj_ref[0]

    # feed-forward branch
    h2 = _layernorm(x, ln2g_ref[0], ln2b_ref[0])
    ff = jnp.dot(h2, w_ff1_ref[0], preferred_element_type=jnp.float32) + b_ff1_ref[0]
    ff = jnp.maximum(ff, 0.0)
    ff = jnp.dot(ff, w_ff2_ref[0], preferred_element_type=jnp.float32) + b_ff2_ref[0]
    # (ffn dropout is identity in eval mode)
    x = x + ff

    x_scr[...] = x

    # ---- last-layer epilogue: final LayerNorm + LM head (lane-dense logits).
    @pl.when(layer == pl.num_programs(0) - 1)
    def _():
        hf = _layernorm(x, lnfg_ref[...], lnfb_ref[...])
        logits = jnp.dot(hf, w_head_ref[...],
                         preferred_element_type=jnp.float32) + b_head_ref[...]
        logits_ref[...] = logits.astype(logits_ref.dtype)


# ---------------------------------------------------------------------------
# Host-side wrapper: one pallas_call for the whole forward.
# ---------------------------------------------------------------------------
def model_forward(idx, params, *, num_heads, head_size, vocab_size):
    """idx: (B, T) int32.  Returns logits (B, T, vocab_size)."""
    B, T = idx.shape
    BT = B * T
    Vp, C = params["tok_table"].shape            # (128, C) padded table
    L = params["w_qkv"].shape[0]
    F4 = params["w_ff1"].shape[2]

    idx_col = idx.reshape(BT, 1).astype(jnp.int32)
    pos_slice = params["pos_table"][:T]          # arange(T) lookup == slice

    def cspec(shape):                            # grid-invariant full block
        return pl.BlockSpec(shape, lambda l, _n=len(shape): (0,) * _n)

    def lspec(shape):                            # per-layer block of a (L, ...) stack
        return pl.BlockSpec((1,) + shape,
                            lambda l, _n=len(shape): (l,) + (0,) * _n)

    kern = functools.partial(fused_forward_kernel, batch=B, seq_len=T,
                             num_heads=num_heads, head_size=head_size)

    out = pl.pallas_call(
        kern,
        out_shape=jax.ShapeDtypeStruct((BT, Vp), jnp.float32),
        grid=(L,),
        in_specs=[
            cspec((BT, 1)),                      # token ids
            cspec((Vp, C)),                      # padded token-embedding table
            cspec((T, C)),                       # position embeddings [:T]
            lspec((1, C)), lspec((1, C)),        # ln1 gamma, beta
            lspec((C, 3 * C)),                   # stacked qkv weight
            lspec((C, C)), lspec((1, C)),        # proj w, b
            lspec((1, C)), lspec((1, C)),        # ln2 gamma, beta
            lspec((C, F4)), lspec((1, F4)),      # ffn w1, b1
            lspec((F4, C)), lspec((1, C)),       # ffn w2, b2
            cspec((1, C)), cspec((1, C)),        # final LN gamma, beta
            cspec((C, Vp)), cspec((1, Vp)),      # padded LM head w, b
        ],
        out_specs=cspec((BT, Vp)),
        scratch_shapes=[pltpu.VMEM((BT, C), jnp.float32)],   # x carried across layers
        compiler_params=pltpu.CompilerParams(
            dimension_semantics=("arbitrary",)),
    )(idx_col, params["tok_table"], pos_slice,
      params["ln1_g"], params["ln1_b"], params["w_qkv"],
      params["w_proj"], params["b_proj"],
      params["ln2_g"], params["ln2_b"],
      params["w_ff1"], params["b_ff1"], params["w_ff2"], params["b_ff2"],
      params["lnf_g"], params["lnf_b"], params["w_head"], params["b_head"])

    return out.reshape(B, T, Vp)[:, :, :vocab_size]


# ---------------------------------------------------------------------------
# Pure-JAX reference (mirrors the PyTorch module, eval mode).
# ---------------------------------------------------------------------------
def _ln_ref(x, g, b):
    mu = jnp.mean(x, axis=-1, keepdims=True)
    var = jnp.mean((x - mu) ** 2, axis=-1, keepdims=True)
    return (x - mu) / jnp.sqrt(var + LN_EPS) * g + b


def reference_forward(idx, params, *, num_heads, head_size, vocab_size):
    B, T = idx.shape
    C = params["tok_table"].shape[1]
    x = params["tok_table"][idx] + params["pos_table"][:T][None]
    mask = jnp.tril(jnp.ones((T, T), bool))
    L = params["w_qkv"].shape[0]
    for l in range(L):
        h = _ln_ref(x, params["ln1_g"][l], params["ln1_b"][l])
        qkv = h @ params["w_qkv"][l]
        q, k, v = qkv[..., :C], qkv[..., C:2 * C], qkv[..., 2 * C:]
        outs = []
        for hh in range(num_heads):
            lo, hi = hh * head_size, (hh + 1) * head_size
            wei = jnp.einsum("btd,bsd->bts", q[..., lo:hi], k[..., lo:hi])
            wei = wei * head_size ** (-0.5)
            wei = jnp.where(mask[None], wei, -jnp.inf)
            p = jax.nn.softmax(wei, axis=-1)
            outs.append(jnp.einsum("bts,bsd->btd", p, v[..., lo:hi]))
        att = jnp.concatenate(outs, axis=-1) @ params["w_proj"][l] + params["b_proj"][l]
        x = x + att
        h2 = _ln_ref(x, params["ln2_g"][l], params["ln2_b"][l])
        ff = jnp.maximum(h2 @ params["w_ff1"][l] + params["b_ff1"][l], 0.0)
        ff = ff @ params["w_ff2"][l] + params["b_ff2"][l]
        x = x + ff
    x = _ln_ref(x, params["lnf_g"], params["lnf_b"])
    logits = x @ params["w_head"] + params["b_head"]
    return logits[..., :vocab_size]


# ---------------------------------------------------------------------------
# Self-contained test.
# ---------------------------------------------------------------------------
if __name__ == "__main__":
    # Small shapes consistent with the module (n_embd = n_head * head_size).
    vocab_size = 65
    n_embd = 64
    n_head = 4
    head_size = n_embd // n_head     # 16 (matches the spec's head_size)
    n_layer = 2
    block_size = 32
    B, T = 2, 16

    key = jax.random.PRNGKey(0)

    def nrm(k, shape, scale=0.1):
        return jax.random.normal(k, shape, jnp.float32) * scale

    key, k_tok, k_pos, k_idx = jax.random.split(key, 4)
    tok_table = nrm(k_tok, (vocab_size, n_embd), 1.0)
    pos_table = nrm(k_pos, (block_size, n_embd), 1.0)

    ln1_g, ln1_b, w_qkv, w_proj, b_proj = [], [], [], [], []
    ln2_g, ln2_b, w_ff1, b_ff1, w_ff2, b_ff2 = [], [], [], [], [], []
    for _ in range(n_layer):
        key, kq, kk_, kv, kp, kbp, k1, kb1, k2, kb2, kg1, kb1n, kg2, kb2n = \
            jax.random.split(key, 14)
        # per-head (C, D) projections stacked along the output axis:
        # columns [0,C) = all heads' q, [C,2C) = k, [2C,3C) = v.
        w_q = nrm(kq, (n_embd, n_embd))
        w_k = nrm(kk_, (n_embd, n_embd))
        w_v = nrm(kv, (n_embd, n_embd))
        ln1_g.append(1.0 + nrm(kg1, (1, n_embd), 0.02))
        ln1_b.append(nrm(kb1n, (1, n_embd), 0.02))
        w_qkv.append(jnp.concatenate([w_q, w_k, w_v], axis=1))      # (C, 3C)
        w_proj.append(nrm(kp, (n_embd, n_embd)))
        b_proj.append(nrm(kbp, (1, n_embd)))
        ln2_g.append(1.0 + nrm(kg2, (1, n_embd), 0.02))
        ln2_b.append(nrm(kb2n, (1, n_embd), 0.02))
        w_ff1.append(nrm(k1, (n_embd, 4 * n_embd)))
        b_ff1.append(nrm(kb1, (1, 4 * n_embd)))
        w_ff2.append(nrm(k2, (4 * n_embd, n_embd)))
        b_ff2.append(nrm(kb2, (1, n_embd)))

    key, kg, kb, kw, kbh = jax.random.split(key, 5)
    lnf_g = 1.0 + nrm(kg, (1, n_embd), 0.02)
    lnf_b = nrm(kb, (1, n_embd), 0.02)
    w_head = nrm(kw, (n_embd, vocab_size))
    b_head = nrm(kbh, (1, vocab_size))

    # Pad vocab axis to 128 lanes (extra table rows are zero and never selected;
    # extra logit columns are sliced off on the host).
    tok_table_pad = jnp.zeros((VOCAB_PAD, n_embd), jnp.float32).at[:vocab_size].set(tok_table)
    w_head_pad = jnp.zeros((n_embd, VOCAB_PAD), jnp.float32).at[:, :vocab_size].set(w_head)
    b_head_pad = jnp.zeros((1, VOCAB_PAD), jnp.float32).at[:, :vocab_size].set(b_head)

    params = {
        "tok_table": tok_table_pad,
        "pos_table": pos_table,
        "ln1_g": jnp.stack(ln1_g), "ln1_b": jnp.stack(ln1_b),
        "w_qkv": jnp.stack(w_qkv),
        "w_proj": jnp.stack(w_proj), "b_proj": jnp.stack(b_proj),
        "ln2_g": jnp.stack(ln2_g), "ln2_b": jnp.stack(ln2_b),
        "w_ff1": jnp.stack(w_ff1), "b_ff1": jnp.stack(b_ff1),
        "w_ff2": jnp.stack(w_ff2), "b_ff2": jnp.stack(b_ff2),
        "lnf_g": lnf_g, "lnf_b": lnf_b,
        "w_head": w_head_pad, "b_head": b_head_pad,
    }

    idx = jax.random.randint(k_idx, (B, T), 0, vocab_size, dtype=jnp.int32)

    logits = model_forward(idx, params, num_heads=n_head, head_size=head_size,
                           vocab_size=vocab_size)
    jax.block_until_ready(logits)

    assert logits.shape == (B, T, vocab_size)
    assert bool(jnp.all(jnp.isfinite(logits)))

    ref = reference_forward(idx, params, num_heads=n_head, head_size=head_size,
                            vocab_size=vocab_size)
    max_err = float(jnp.max(jnp.abs(logits - ref)))
    # approx reciprocal in the softmax gives a small relative error vs exact softmax
    assert max_err < 5e-2, f"max abs error {max_err}"

    print("KERNEL_OK")
</pallas_src>

<mosaic_0001>
module attributes {stable_mosaic.version = 11 : i64} {
  func.func @fused_forward_kernel(%arg0: i32, %arg1: memref<32x1xi32, #tpu.memory_space<vmem>>, %arg2: memref<128x64xf32, #tpu.memory_space<vmem>>, %arg3: memref<16x64xf32, #tpu.memory_space<vmem>>, %arg4: memref<1x1x64xf32, #tpu.memory_space<vmem>>, %arg5: memref<1x1x64xf32, #tpu.memory_space<vmem>>, %arg6: memref<1x64x192xf32, #tpu.memory_space<vmem>>, %arg7: memref<1x64x64xf32, #tpu.memory_space<vmem>>, %arg8: memref<1x1x64xf32, #tpu.memory_space<vmem>>, %arg9: memref<1x1x64xf32, #tpu.memory_space<vmem>>, %arg10: memref<1x1x64xf32, #tpu.memory_space<vmem>>, %arg11: memref<1x64x256xf32, #tpu.memory_space<vmem>>, %arg12: memref<1x1x256xf32, #tpu.memory_space<vmem>>, %arg13: memref<1x256x64xf32, #tpu.memory_space<vmem>>, %arg14: memref<1x1x64xf32, #tpu.memory_space<vmem>>, %arg15: memref<1x64xf32, #tpu.memory_space<vmem>>, %arg16: memref<1x64xf32, #tpu.memory_space<vmem>>, %arg17: memref<64x128xf32, #tpu.memory_space<vmem>>, %arg18: memref<1x128xf32, #tpu.memory_space<vmem>>, %arg19: memref<32x128xf32, #tpu.memory_space<vmem>>, %arg20: memref<32x64xf32, #tpu.memory_space<vmem>>) attributes {dimension_semantics = [#tpu.dimension_semantics<arbitrary>], iteration_bounds = array<i64: 2>, scalar_prefetch = 0 : i64, scratch_operands = 1 : i64, tpu.core_type = #tpu.core_type<tc>, window_params = [{pipeline_mode = #tpu.pipeline_mode<synchronous>, transform_indices = @transform_0, window_bounds = array<i64: 32, 1>}, {pipeline_mode = #tpu.pipeline_mode<synchronous>, transform_indices = @transform_1, window_bounds = array<i64: 128, 64>}, {pipeline_mode = #tpu.pipeline_mode<synchronous>, transform_indices = @transform_2, window_bounds = array<i64: 16, 64>}, {transform_indices = @transform_3, window_bounds = array<i64: 1, 1, 64>}, {transform_indices = @transform_4, window_bounds = array<i64: 1, 1, 64>}, {transform_indices = @transform_5, window_bounds = array<i64: 1, 64, 192>}, {transform_indices = @transform_6, window_bounds = array<i64: 1, 64, 64>}, {transform_indices = @transform_7, window_bounds = array<i64: 1, 1, 64>}, {transform_indices = @transform_8, window_bounds = array<i64: 1, 1, 64>}, {transform_indices = @transform_9, window_bounds = array<i64: 1, 1, 64>}, {transform_indices = @transform_10, window_bounds = array<i64: 1, 64, 256>}, {transform_indices = @transform_11, window_bounds = array<i64: 1, 1, 256>}, {transform_indices = @transform_12, window_bounds = array<i64: 1, 256, 64>}, {transform_indices = @transform_13, window_bounds = array<i64: 1, 1, 64>}, {pipeline_mode = #tpu.pipeline_mode<synchronous>, transform_indices = @transform_14, window_bounds = array<i64: 1, 64>}, {pipeline_mode = #tpu.pipeline_mode<synchronous>, transform_indices = @transform_15, window_bounds = array<i64: 1, 64>}, {pipeline_mode = #tpu.pipeline_mode<synchronous>, transform_indices = @transform_16, window_bounds = array<i64: 64, 128>}, {pipeline_mode = #tpu.pipeline_mode<synchronous>, transform_indices = @transform_17, window_bounds = array<i64: 1, 128>}, {pipeline_mode = #tpu.pipeline_mode<synchronous>, transform_indices = @transform_18, window_bounds = array<i64: 32, 128>}]} {
    %c0_i32 = arith.constant 0 : i32
    %0 = arith.cmpi eq, %arg0, %c0_i32 : i32
    %1 = arith.extui %0 : i1 to i32
    %c0_i32_0 = arith.constant 0 : i32
    %2 = arith.cmpi ne, %1, %c0_i32_0 : i32
    scf.if %2 {
      %c0_104 = arith.constant 0 : index
      %c0_105 = arith.constant 0 : index
      %278 = vector.load %arg1[%c0_104, %c0_105] : memref<32x1xi32, #tpu.memory_space<vmem>>, vector<32x1xi32>
      %279 = tpu.iota {dimensions = array<i32: 1>} : vector<32x128xi32>
      %280 = vector.broadcast %278 : vector<32x1xi32> to vector<32x128xi32>
      %281 = arith.cmpi eq, %279, %280 : vector<32x128xi32>
      %282 = arith.extui %281 : vector<32x128xi1> to vector<32x128xi32>
      %283 = arith.sitofp %282 : vector<32x128xi32> to vector<32x128xf32>
      %c0_106 = arith.constant 0 : index
      %c0_107 = arith.constant 0 : index
      %284 = vector.load %arg2[%c0_106, %c0_107] : memref<128x64xf32, #tpu.memory_space<vmem>>, vector<128x64xf32>
      %cst_108 = arith.constant dense<0.000000e+00> : vector<32x64xf32>
      %285 = tpu.matmul %283, %284, %cst_108 {dimension_numbers = #tpu.dot_dimension_numbers<[1], [0], [0], [1], [0, 0, 1, 1], [], []>} : vector<32x128xf32>, vector<128x64xf32>, vector<32x64xf32> -> vector<32x64xf32>
      %c0_109 = arith.constant 0 : index
      %c0_110 = arith.constant 0 : index
      %286 = vector.load %arg3[%c0_109, %c0_110] : memref<16x64xf32, #tpu.memory_space<vmem>>, vector<16x64xf32>
      %287 = tpu.concatenate %286, %286 in 0 : vector<16x64xf32>, vector<16x64xf32> -> vector<32x64xf32>
      %288 = arith.addf %285, %287 : vector<32x64xf32>
      %c0_111 = arith.constant 0 : index
      %c0_112 = arith.constant 0 : index
      %289 = vector.load %arg20[%c0_111, %c0_112] : memref<32x64xf32, #tpu.memory_space<vmem>>, vector<32x64xf32>
      tpu.vector_store %arg20[%c0_111, %c0_112], %288 {strides = array<i32>} : memref<32x64xf32, #tpu.memory_space<vmem>>, vector<32x64xf32>,
    } else {
    }
    %c0 = arith.constant 0 : index
    %c0_1 = arith.constant 0 : index
    %3 = vector.load %arg20[%c0, %c0_1] : memref<32x64xf32, #tpu.memory_space<vmem>>, vector<32x64xf32>
    %c0_2 = arith.constant 0 : index
    %c0_3 = arith.constant 0 : index
    %c0_4 = arith.constant 0 : index
    %4 = vector.load %arg4[%c0_2, %c0_3, %c0_4] : memref<1x1x64xf32, #tpu.memory_space<vmem>>, vector<1x1x64xf32>
    %5 = vector.shape_cast %4 : vector<1x1x64xf32> to vector<1x64xf32>
    %c0_5 = arith.constant 0 : index
    %c0_6 = arith.constant 0 : index
    %c0_7 = arith.constant 0 : index
    %6 = vector.load %arg5[%c0_5, %c0_6, %c0_7] : memref<1x1x64xf32, #tpu.memory_space<vmem>>, vector<1x1x64xf32>
    %7 = vector.shape_cast %6 : vector<1x1x64xf32> to vector<1x64xf32>
    %cst = arith.constant dense<0.000000e+00> : vector<32xf32>
    %8 = vector.multi_reduction <add>, %3, %cst [1] : vector<32x64xf32> to vector<32xf32>
    %9 = vector.shape_cast %8 : vector<32xf32> to vector<32x1xf32>
    %cst_8 = arith.constant 6.400000e+01 : f32
    %10 = vector.broadcast %cst_8 : f32 to vector<32x1xf32>
    %11 = arith.divf %9, %10 : vector<32x1xf32>
    %12 = vector.broadcast %11 : vector<32x1xf32> to vector<32x64xf32>
    %13 = arith.subf %3, %12 : vector<32x64xf32>
    %14 = arith.mulf %13, %13 : vector<32x64xf32>
    %cst_9 = arith.constant dense<0.000000e+00> : vector<32xf32>
    %15 = vector.multi_reduction <add>, %14, %cst_9 [1] : vector<32x64xf32> to vector<32xf32>
    %16 = vector.shape_cast %15 : vector<32xf32> to vector<32x1xf32>
    %cst_10 = arith.constant 6.400000e+01 : f32
    %17 = vector.broadcast %cst_10 : f32 to vector<32x1xf32>
    %18 = arith.divf %16, %17 : vector<32x1xf32>
    %cst_11 = arith.constant 9.99999974E-6 : f32
    %19 = vector.broadcast %cst_11 : f32 to vector<32x1xf32>
    %20 = arith.addf %18, %19 : vector<32x1xf32>
    %21 = math.rsqrt %20 : vector<32x1xf32>
    %22 = vector.broadcast %21 : vector<32x1xf32> to vector<32x64xf32>
    %23 = arith.mulf %13, %22 : vector<32x64xf32>
    %24 = vector.broadcast %5 : vector<1x64xf32> to vector<32x64xf32>
    %25 = arith.mulf %23, %24 : vector<32x64xf32>
    %26 = vector.broadcast %7 : vector<1x64xf32> to vector<32x64xf32>
    %27 = arith.addf %25, %26 : vector<32x64xf32>
    %c0_12 = arith.constant 0 : index
    %c0_13 = arith.constant 0 : index
    %c0_14 = arith.constant 0 : index
    %28 = vector.load %arg6[%c0_12, %c0_13, %c0_14] : memref<1x64x192xf32, #tpu.memory_space<vmem>>, vector<1x64x192xf32>
    %29 = vector.shape_cast %28 : vector<1x64x192xf32> to vector<64x192xf32>
    %cst_15 = arith.constant dense<0.000000e+00> : vector<32x192xf32>
    %30 = tpu.matmul %27, %29, %cst_15 {dimension_numbers = #tpu.dot_dimension_numbers<[1], [0], [0], [1], [0, 0, 1, 1], [], []>} : vector<32x64xf32>, vector<64x192xf32>, vector<32x192xf32> -> vector<32x192xf32>
    %31 = vector.extract_strided_slice %30 {offsets = [0, 0], sizes = [32, 64], strides = [1, 1]} : vector<32x192xf32> to vector<32x64xf32>
    %32 = vector.extract_strided_slice %30 {offsets = [0, 64], sizes = [32, 64], strides = [1, 1]} : vector<32x192xf32> to vector<32x64xf32>
    %33 = vector.extract_strided_slice %30 {offsets = [0, 128], sizes = [32, 64], strides = [1, 1]} : vector<32x192xf32> to vector<32x64xf32>
    %c0_16 = arith.constant 0 : index
    %c0_17 = arith.constant 0 : index
    %c0_18 = arith.constant 0 : index
    %34 = vector.load %arg7[%c0_16, %c0_17, %c0_18] : memref<1x64x64xf32, #tpu.memory_space<vmem>>, vector<1x64x64xf32>
    %35 = vector.shape_cast %34 : vector<1x64x64xf32> to vector<64x64xf32>
    %36 = tpu.iota {dimensions = array<i32: 0>} : vector<16x16xi32>
    %37 = tpu.iota {dimensions = array<i32: 1>} : vector<16x16xi32>
    %38 = arith.cmpi sle, %37, %36 : vector<16x16xi32>
    %cst_19 = arith.constant 0.000000e+00 : f32
    %39 = vector.broadcast %cst_19 : f32 to vector<32x64xf32>
    %40 = vector.extract_strided_slice %31 {offsets = [0, 0], sizes = [32, 16], strides = [1, 1]} : vector<32x64xf32> to vector<32x16xf32>
    %41 = vector.extract_strided_slice %32 {offsets = [0, 0], sizes = [32, 16], strides = [1, 1]} : vector<32x64xf32> to vector<32x16xf32>
    %42 = vector.extract_strided_slice %33 {offsets = [0, 0], sizes = [32, 16], strides = [1, 1]} : vector<32x64xf32> to vector<32x16xf32>
    %43 = vector.extract_strided_slice %40 {offsets = [0, 0], sizes = [16, 16], strides = [1, 1]} : vector<32x16xf32> to vector<16x16xf32>
    %44 = vector.extract_strided_slice %41 {offsets = [0, 0], sizes = [16, 16], strides = [1, 1]} : vector<32x16xf32> to vector<16x16xf32>
    %45 = tpu.transpose %44, [1, 0] : vector<16x16xf32> -> vector<16x16xf32>
    %cst_20 = arith.constant dense<0.000000e+00> : vector<16x16xf32>
    %46 = tpu.matmul %43, %45, %cst_20 {dimension_numbers = #tpu.dot_dimension_numbers<[1], [0], [0], [1], [0, 0, 1, 1], [], []>} : vector<16x16xf32>, vector<16x16xf32>, vector<16x16xf32> -> vector<16x16xf32>
    %cst_21 = arith.constant 2.500000e-01 : f32
    %47 = vector.broadcast %cst_21 : f32 to vector<16x16xf32>
    %48 = arith.mulf %46, %47 : vector<16x16xf32>
    %cst_22 = arith.constant -1.000000e+30 : f32
    %49 = vector.broadcast %cst_22 : f32 to vector<16x16xf32>
    %50 = arith.select %38, %48, %49 : vector<16x16xi1>, vector<16x16xf32>
    %cst_23 = arith.constant dense<0xFF800000> : vector<16xf32>
    %51 = vector.multi_reduction <maximumf>, %50, %cst_23 [1] : vector<16x16xf32> to vector<16xf32>
    %52 = vector.shape_cast %51 : vector<16xf32> to vector<16x1xf32>
    %53 = vector.broadcast %52 : vector<16x1xf32> to vector<16x16xf32>
    %54 = arith.subf %50, %53 : vector<16x16xf32>
    %55 = math.exp %54 : vector<16x16xf32>
    %cst_24 = arith.constant dense<0.000000e+00> : vector<16xf32>
    %56 = vector.multi_reduction <add>, %55, %cst_24 [1] : vector<16x16xf32> to vector<16xf32>
    %57 = vector.shape_cast %56 : vector<16xf32> to vector<16x1xf32>
    %58 = tpu.reciprocal %57 {approx = true} : vector<16x1xf32> -> vector<16x1xf32>
    %59 = vector.broadcast %58 : vector<16x1xf32> to vector<16x16xf32>
    %60 = arith.mulf %55, %59 : vector<16x16xf32>
    %61 = vector.extract_strided_slice %42 {offsets = [0, 0], sizes = [16, 16], strides = [1, 1]} : vector<32x16xf32> to vector<16x16xf32>
    %cst_25 = arith.constant dense<0.000000e+00> : vector<16x16xf32>
    %62 = tpu.matmul %60, %61, %cst_25 {dimension_numbers = #tpu.dot_dimension_numbers<[1], [0], [0], [1], [0, 0, 1, 1], [], []>} : vector<16x16xf32>, vector<16x16xf32>, vector<16x16xf32> -> vector<16x16xf32>
    %63 = vector.extract_strided_slice %40 {offsets = [16, 0], sizes = [16, 16], strides = [1, 1]} : vector<32x16xf32> to vector<16x16xf32>
    %64 = vector.extract_strided_slice %41 {offsets = [16, 0], sizes = [16, 16], strides = [1, 1]} : vector<32x16xf32> to vector<16x16xf32>
    %65 = tpu.transpose %64, [1, 0] : vector<16x16xf32> -> vector<16x16xf32>
    %cst_26 = arith.constant dense<0.000000e+00> : vector<16x16xf32>
    %66 = tpu.matmul %63, %65, %cst_26 {dimension_numbers = #tpu.dot_dimension_numbers<[1], [0], [0], [1], [0, 0, 1, 1], [], []>} : vector<16x16xf32>, vector<16x16xf32>, vector<16x16xf32> -> vector<16x16xf32>
    %cst_27 = arith.constant 2.500000e-01 : f32
    %67 = vector.broadcast %cst_27 : f32 to vector<16x16xf32>
    %68 = arith.mulf %66, %67 : vector<16x16xf32>
    %cst_28 = arith.constant -1.000000e+30 : f32
    %69 = vector.broadcast %cst_28 : f32 to vector<16x16xf32>
    %70 = arith.select %38, %68, %69 : vector<16x16xi1>, vector<16x16xf32>
    %cst_29 = arith.constant dense<0xFF800000> : vector<16xf32>
    %71 = vector.multi_reduction <maximumf>, %70, %cst_29 [1] : vector<16x16xf32> to vector<16xf32>
    %72 = vector.shape_cast %71 : vector<16xf32> to vector<16x1xf32>
    %73 = vector.broadcast %72 : vector<16x1xf32> to vector<16x16xf32>
    %74 = arith.subf %70, %73 : vector<16x16xf32>
    %75 = math.exp %74 : vector<16x16xf32>
    %cst_30 = arith.constant dense<0.000000e+00> : vector<16xf32>
    %76 = vector.multi_reduction <add>, %75, %cst_30 [1] : vector<16x16xf32> to vector<16xf32>
    %77 = vector.shape_cast %76 : vector<16xf32> to vector<16x1xf32>
    %78 = tpu.reciprocal %77 {approx = true} : vector<16x1xf32> -> vector<16x1xf32>
    %79 = vector.broadcast %78 : vector<16x1xf32> to vector<16x16xf32>
    %80 = arith.mulf %75, %79 : vector<16x16xf32>
    %81 = vector.extract_strided_slice %42 {offsets = [16, 0], sizes = [16, 16], strides = [1, 1]} : vector<32x16xf32> to vector<16x16xf32>
    %cst_31 = arith.constant dense<0.000000e+00> : vector<16x16xf32>
    %82 = tpu.matmul %80, %81, %cst_31 {dimension_numbers = #tpu.dot_dimension_numbers<[1], [0], [0], [1], [0, 0, 1, 1], [], []>} : vector<16x16xf32>, vector<16x16xf32>, vector<16x16xf32> -> vector<16x16xf32>
    %83 = tpu.concatenate %62, %82 in 0 : vector<16x16xf32>, vector<16x16xf32> -> vector<32x16xf32>
    %84 = vector.extract_strided_slice %35 {offsets = [0, 0], sizes = [16, 64], strides = [1, 1]} : vector<64x64xf32> to vector<16x64xf32>
    %cst_32 = arith.constant dense<0.000000e+00> : vector<32x64xf32>
    %85 = tpu.matmul %83, %84, %cst_32 {dimension_numbers = #tpu.dot_dimension_numbers<[1], [0], [0], [1], [0, 0, 1, 1], [], []>} : vector<32x16xf32>, vector<16x64xf32>, vector<32x64xf32> -> vector<32x64xf32>
    %86 = arith.addf %39, %85 : vector<32x64xf32>
    %87 = vector.extract_strided_slice %31 {offsets = [0, 16], sizes = [32, 16], strides = [1, 1]} : vector<32x64xf32> to vector<32x16xf32>
    %88 = vector.extract_strided_slice %32 {offsets = [0, 16], sizes = [32, 16], strides = [1, 1]} : vector<32x64xf32> to vector<32x16xf32>
    %89 = vector.extract_strided_slice %33 {offsets = [0, 16], sizes = [32, 16], strides = [1, 1]} : vector<32x64xf32> to vector<32x16xf32>
    %90 = vector.extract_strided_slice %87 {offsets = [0, 0], sizes = [16, 16], strides = [1, 1]} : vector<32x16xf32> to vector<16x16xf32>
    %91 = vector.extract_strided_slice %88 {offsets = [0, 0], sizes = [16, 16], strides = [1, 1]} : vector<32x16xf32> to vector<16x16xf32>
    %92 = tpu.transpose %91, [1, 0] : vector<16x16xf32> -> vector<16x16xf32>
    %cst_33 = arith.constant dense<0.000000e+00> : vector<16x16xf32>
    %93 = tpu.matmul %90, %92, %cst_33 {dimension_numbers = #tpu.dot_dimension_numbers<[1], [0], [0], [1], [0, 0, 1, 1], [], []>} : vector<16x16xf32>, vector<16x16xf32>, vector<16x16xf32> -> vector<16x16xf32>
    %cst_34 = arith.constant 2.500000e-01 : f32
    %94 = vector.broadcast %cst_34 : f32 to vector<16x16xf32>
    %95 = arith.mulf %93, %94 : vector<16x16xf32>
    %cst_35 = arith.constant -1.000000e+30 : f32
    %96 = vector.broadcast %cst_35 : f32 to vector<16x16xf32>
    %97 = arith.select %38, %95, %96 : vector<16x16xi1>, vector<16x16xf32>
    %cst_36 = arith.constant dense<0xFF800000> : vector<16xf32>
    %98 = vector.multi_reduction <maximumf>, %97, %cst_36 [1] : vector<16x16xf32> to vector<16xf32>
    %99 = vector.shape_cast %98 : vector<16xf32> to vector<16x1xf32>
    %100 = vector.broadcast %99 : vector<16x1xf32> to vector<16x16xf32>
    %101 = arith.subf %97, %100 : vector<16x16xf32>
    %102 = math.exp %101 : vector<16x16xf32>
    %cst_37 = arith.constant dense<0.000000e+00> : vector<16xf32>
    %103 = vector.multi_reduction <add>, %102, %cst_37 [1] : vector<16x16xf32> to vector<16xf32>
    %104 = vector.shape_cast %103 : vector<16xf32> to vector<16x1xf32>
    %105 = tpu.reciprocal %104 {approx = true} : vector<16x1xf32> -> vector<16x1xf32>
    %106 = vector.broadcast %105 : vector<16x1xf32> to vector<16x16xf32>
    %107 = arith.mulf %102, %106 : vector<16x16xf32>
    %108 = vector.extract_strided_slice %89 {offsets = [0, 0], sizes = [16, 16], strides = [1, 1]} : vector<32x16xf32> to vector<16x16xf32>
    %cst_38 = arith.constant dense<0.000000e+00> : vector<16x16xf32>
    %109 = tpu.matmul %107, %108, %cst_38 {dimension_numbers = #tpu.dot_dimension_numbers<[1], [0], [0], [1], [0, 0, 1, 1], [], []>} : vector<16x16xf32>, vector<16x16xf32>, vector<16x16xf32> -> vector<16x16xf32>
    %110 = vector.extract_strided_slice %87 {offsets = [16, 0], sizes = [16, 16], strides = [1, 1]} : vector<32x16xf32> to vector<16x16xf32>
    %111 = vector.extract_strided_slice %88 {offsets = [16, 0], sizes = [16, 16], strides = [1, 1]} : vector<32x16xf32> to vector<16x16xf32>
    %112 = tpu.transpose %111, [1, 0] : vector<16x16xf32> -> vector<16x16xf32>
    %cst_39 = arith.constant dense<0.000000e+00> : vector<16x16xf32>
    %113 = tpu.matmul %110, %112, %cst_39 {dimension_numbers = #tpu.dot_dimension_numbers<[1], [0], [0], [1], [0, 0, 1, 1], [], []>} : vector<16x16xf32>, vector<16x16xf32>, vector<16x16xf32> -> vector<16x16xf32>
    %cst_40 = arith.constant 2.500000e-01 : f32
    %114 = vector.broadcast %cst_40 : f32 to vector<16x16xf32>
    %115 = arith.mulf %113, %114 : vector<16x16xf32>
    %cst_41 = arith.constant -1.000000e+30 : f32
    %116 = vector.broadcast %cst_41 : f32 to vector<16x16xf32>
    %117 = arith.select %38, %115, %116 : vector<16x16xi1>, vector<16x16xf32>
    %cst_42 = arith.constant dense<0xFF800000> : vector<16xf32>
    %118 = vector.multi_reduction <maximumf>, %117, %cst_42 [1] : vector<16x16xf32> to vector<16xf32>
    %119 = vector.shape_cast %118 : vector<16xf32> to vector<16x1xf32>
    %120 = vector.broadcast %119 : vector<16x1xf32> to vector<16x16xf32>
    %121 = arith.subf %117, %120 : vector<16x16xf32>
    %122 = math.exp %121 : vector<16x16xf32>
    %cst_43 = arith.constant dense<0.000000e+00> : vector<16xf32>
    %123 = vector.multi_reduction <add>, %122, %cst_43 [1] : vector<16x16xf32> to vector<16xf32>
    %124 = vector.shape_cast %123 : vector<16xf32> to vector<16x1xf32>
    %125 = tpu.reciprocal %124 {approx = true} : vector<16x1xf32> -> vector<16x1xf32>
    %126 = vector.broadcast %125 : vector<16x1xf32> to vector<16x16xf32>
    %127 = arith.mulf %122, %126 : vector<16x16xf32>
    %128 = vector.extract_strided_slice %89 {offsets = [16, 0], sizes = [16, 16], strides = [1, 1]} : vector<32x16xf32> to vector<16x16xf32>
    %cst_44 = arith.constant dense<0.000000e+00> : vector<16x16xf32>
    %129 = tpu.matmul %127, %128, %cst_44 {dimension_numbers = #tpu.dot_dimension_numbers<[1], [0], [0], [1], [0, 0, 1, 1], [], []>} : vector<16x16xf32>, vector<16x16xf32>, vector<16x16xf32> -> vector<16x16xf32>
    %130 = tpu.concatenate %109, %129 in 0 : vector<16x16xf32>, vector<16x16xf32> -> vector<32x16xf32>
    %131 = vector.extract_strided_slice %35 {offsets = [16, 0], sizes = [16, 64], strides = [1, 1]} : vector<64x64xf32> to vector<16x64xf32>
    %cst_45 = arith.constant dense<0.000000e+00> : vector<32x64xf32>
    %132 = tpu.matmul %130, %131, %cst_45 {dimension_numbers = #tpu.dot_dimension_numbers<[1], [0], [0], [1], [0, 0, 1, 1], [], []>} : vector<32x16xf32>, vector<16x64xf32>, vector<32x64xf32> -> vector<32x64xf32>
    %133 = arith.addf %86, %132 : vector<32x64xf32>
    %134 = vector.extract_strided_slice %31 {offsets = [0, 32], sizes = [32, 16], strides = [1, 1]} : vector<32x64xf32> to vector<32x16xf32>
    %135 = vector.extract_strided_slice %32 {offsets = [0, 32], sizes = [32, 16], strides = [1, 1]} : vector<32x64xf32> to vector<32x16xf32>
    %136 = vector.extract_strided_slice %33 {offsets = [0, 32], sizes = [32, 16], strides = [1, 1]} : vector<32x64xf32> to vector<32x16xf32>
    %137 = vector.extract_strided_slice %134 {offsets = [0, 0], sizes = [16, 16], strides = [1, 1]} : vector<32x16xf32> to vector<16x16xf32>
    %138 = vector.extract_strided_slice %135 {offsets = [0, 0], sizes = [16, 16], strides = [1, 1]} : vector<32x16xf32> to vector<16x16xf32>
    %139 = tpu.transpose %138, [1, 0] : vector<16x16xf32> -> vector<16x16xf32>
    %cst_46 = arith.constant dense<0.000000e+00> : vector<16x16xf32>
    %140 = tpu.matmul %137, %139, %cst_46 {dimension_numbers = #tpu.dot_dimension_numbers<[1], [0], [0], [1], [0, 0, 1, 1], [], []>} : vector<16x16xf32>, vector<16x16xf32>, vector<16x16xf32> -> vector<16x16xf32>
    %cst_47 = arith.constant 2.500000e-01 : f32
    %141 = vector.broadcast %cst_47 : f32 to vector<16x16xf32>
    %142 = arith.mulf %140, %141 : vector<16x16xf32>
    %cst_48 = arith.constant -1.000000e+30 : f32
    %143 = vector.broadcast %cst_48 : f32 to vector<16x16xf32>
    %144 = arith.select %38, %142, %143 : vector<16x16xi1>, vector<16x16xf32>
    %cst_49 = arith.constant dense<0xFF800000> : vector<16xf32>
    %145 = vector.multi_reduction <maximumf>, %144, %cst_49 [1] : vector<16x16xf32> to vector<16xf32>
    %146 = vector.shape_cast %145 : vector<16xf32> to vector<16x1xf32>
    %147 = vector.broadcast %146 : vector<16x1xf32> to vector<16x16xf32>
    %148 = arith.subf %144, %147 : vector<16x16xf32>
    %149 = math.exp %148 : vector<16x16xf32>
    %cst_50 = arith.constant dense<0.000000e+00> : vector<16xf32>
    %150 = vector.multi_reduction <add>, %149, %cst_50 [1] : vector<16x16xf32> to vector<16xf32>
    %151 = vector.shape_cast %150 : vector<16xf32> to vector<16x1xf32>
    %152 = tpu.reciprocal %151 {approx = true} : vector<16x1xf32> -> vector<16x1xf32>
    %153 = vector.broadcast %152 : vector<16x1xf32> to vector<16x16xf32>
    %154 = arith.mulf %149, %153 : vector<16x16xf32>
    %155 = vector.extract_strided_slice %136 {offsets = [0, 0], sizes = [16, 16], strides = [1, 1]} : vector<32x16xf32> to vector<16x16xf32>
    %cst_51 = arith.constant dense<0.000000e+00> : vector<16x16xf32>
    %156 = tpu.matmul %154, %155, %cst_51 {dimension_numbers = #tpu.dot_dimension_numbers<[1], [0], [0], [1], [0, 0, 1, 1], [], []>} : vector<16x16xf32>, vector<16x16xf32>, vector<16x16xf32> -> vector<16x16xf32>
    %157 = vector.extract_strided_slice %134 {offsets = [16, 0], sizes = [16, 16], strides = [1, 1]} : vector<32x16xf32> to vector<16x16xf32>
    %158 = vector.extract_strided_slice %135 {offsets = [16, 0], sizes = [16, 16], strides = [1, 1]} : vector<32x16xf32> to vector<16x16xf32>
    %159 = tpu.transpose %158, [1, 0] : vector<16x16xf32> -> vector<16x16xf32>
    %cst_52 = arith.constant dense<0.000000e+00> : vector<16x16xf32>
    %160 = tpu.matmul %157, %159, %cst_52 {dimension_numbers = #tpu.dot_dimension_numbers<[1], [0], [0], [1], [0, 0, 1, 1], [], []>} : vector<16x16xf32>, vector<16x16xf32>, vector<16x16xf32> -> vector<16x16xf32>
    %cst_53 = arith.constant 2.500000e-01 : f32
    %161 = vector.broadcast %cst_53 : f32 to vector<16x16xf32>
    %162 = arith.mulf %160, %161 : vector<16x16xf32>
    %cst_54 = arith.constant -1.000000e+30 : f32
    %163 = vector.broadcast %cst_54 : f32 to vector<16x16xf32>
    %164 = arith.select %38, %162, %163 : vector<16x16xi1>, vector<16x16xf32>
    %cst_55 = arith.constant dense<0xFF800000> : vector<16xf32>
    %165 = vector.multi_reduction <maximumf>, %164, %cst_55 [1] : vector<16x16xf32> to vector<16xf32>
    %166 = vector.shape_cast %165 : vector<16xf32> to vector<16x1xf32>
    %167 = vector.broadcast %166 : vector<16x1xf32> to vector<16x16xf32>
    %168 = arith.subf %164, %167 : vector<16x16xf32>
    %169 = math.exp %168 : vector<16x16xf32>
    %cst_56 = arith.constant dense<0.000000e+00> : vector<16xf32>
    %170 = vector.multi_reduction <add>, %169, %cst_56 [1] : vector<16x16xf32> to vector<16xf32>
    %171 = vector.shape_cast %170 : vector<16xf32> to vector<16x1xf32>
    %172 = tpu.reciprocal %171 {approx = true} : vector<16x1xf32> -> vector<16x1xf32>
    %173 = vector.broadcast %172 : vector<16x1xf32> to vector<16x16xf32>
    %174 = arith.mulf %169, %173 : vector<16x16xf32>
    %175 = vector.extract_strided_slice %136 {offsets = [16, 0], sizes = [16, 16], strides = [1, 1]} : vector<32x16xf32> to vector<16x16xf32>
    %cst_57 = arith.constant dense<0.000000e+00> : vector<16x16xf32>
    %176 = tpu.matmul %174, %175, %cst_57 {dimension_numbers = #tpu.dot_dimension_numbers<[1], [0], [0], [1], [0, 0, 1, 1], [], []>} : vector<16x16xf32>, vector<16x16xf32>, vector<16x16xf32> -> vector<16x16xf32>
    %177 = tpu.concatenate %156, %176 in 0 : vector<16x16xf32>, vector<16x16xf32> -> vector<32x16xf32>
    %178 = vector.extract_strided_slice %35 {offsets = [32, 0], sizes = [16, 64], strides = [1, 1]} : vector<64x64xf32> to vector<16x64xf32>
    %cst_58 = arith.constant dense<0.000000e+00> : vector<32x64xf32>
    %179 = tpu.matmul %177, %178, %cst_58 {dimension_numbers = #tpu.dot_dimension_numbers<[1], [0], [0], [1], [0, 0, 1, 1], [], []>} : vector<32x16xf32>, vector<16x64xf32>, vector<32x64xf32> -> vector<32x64xf32>
    %180 = arith.addf %133, %179 : vector<32x64xf32>
    %181 = vector.extract_strided_slice %31 {offsets = [0, 48], sizes = [32, 16], strides = [1, 1]} : vector<32x64xf32> to vector<32x16xf32>
    %182 = vector.extract_strided_slice %32 {offsets = [0, 48], sizes = [32, 16], strides = [1, 1]} : vector<32x64xf32> to vector<32x16xf32>
    %183 = vector.extract_strided_slice %33 {offsets = [0, 48], sizes = [32, 16], strides = [1, 1]} : vector<32x64xf32> to vector<32x16xf32>
    %184 = vector.extract_strided_slice %181 {offsets = [0, 0], sizes = [16, 16], strides = [1, 1]} : vector<32x16xf32> to vector<16x16xf32>
    %185 = vector.extract_strided_slice %182 {offsets = [0, 0], sizes = [16, 16], strides = [1, 1]} : vector<32x16xf32> to vector<16x16xf32>
    %186 = tpu.transpose %185, [1, 0] : vector<16x16xf32> -> vector<16x16xf32>
    %cst_59 = arith.constant dense<0.000000e+00> : vector<16x16xf32>
    %187 = tpu.matmul %184, %186, %cst_59 {dimension_numbers = #tpu.dot_dimension_numbers<[1], [0], [0], [1], [0, 0, 1, 1], [], []>} : vector<16x16xf32>, vector<16x16xf32>, vector<16x16xf32> -> vector<16x16xf32>
    %cst_60 = arith.constant 2.500000e-01 : f32
    %188 = vector.broadcast %cst_60 : f32 to vector<16x16xf32>
    %189 = arith.mulf %187, %188 : vector<16x16xf32>
    %cst_61 = arith.constant -1.000000e+30 : f32
    %190 = vector.broadcast %cst_61 : f32 to vector<16x16xf32>
    %191 = arith.select %38, %189, %190 : vector<16x16xi1>, vector<16x16xf32>
    %cst_62 = arith.constant dense<0xFF800000> : vector<16xf32>
    %192 = vector.multi_reduction <maximumf>, %191, %cst_62 [1] : vector<16x16xf32> to vector<16xf32>
    %193 = vector.shape_cast %192 : vector<16xf32> to vector<16x1xf32>
    %194 = vector.broadcast %193 : vector<16x1xf32> to vector<16x16xf32>
    %195 = arith.subf %191, %194 : vector<16x16xf32>
    %196 = math.exp %195 : vector<16x16xf32>
    %cst_63 = arith.constant dense<0.000000e+00> : vector<16xf32>
    %197 = vector.multi_reduction <add>, %196, %cst_63 [1] : vector<16x16xf32> to vector<16xf32>
    %198 = vector.shape_cast %197 : vector<16xf32> to vector<16x1xf32>
    %199 = tpu.reciprocal %198 {approx = true} : vector<16x1xf32> -> vector<16x1xf32>
    %200 = vector.broadcast %199 : vector<16x1xf32> to vector<16x16xf32>
    %201 = arith.mulf %196, %200 : vector<16x16xf32>
    %202 = vector.extract_strided_slice %183 {offsets = [0, 0], sizes = [16, 16], strides = [1, 1]} : vector<32x16xf32> to vector<16x16xf32>
    %cst_64 = arith.constant dense<0.000000e+00> : vector<16x16xf32>
    %203 = tpu.matmul %201, %202, %cst_64 {dimension_numbers = #tpu.dot_dimension_numbers<[1], [0], [0], [1], [0, 0, 1, 1], [], []>} : vector<16x16xf32>, vector<16x16xf32>, vector<16x16xf32> -> vector<16x16xf32>
    %204 = vector.extract_strided_slice %181 {offsets = [16, 0], sizes = [16, 16], strides = [1, 1]} : vector<32x16xf32> to vector<16x16xf32>
    %205 = vector.extract_strided_slice %182 {offsets = [16, 0], sizes = [16, 16], strides = [1, 1]} : vector<32x16xf32> to vector<16x16xf32>
    %206 = tpu.transpose %205, [1, 0] : vector<16x16xf32> -> vector<16x16xf32>
    %cst_65 = arith.constant dense<0.000000e+00> : vector<16x16xf32>
    %207 = tpu.matmul %204, %206, %cst_65 {dimension_numbers = #tpu.dot_dimension_numbers<[1], [0], [0], [1], [0, 0, 1, 1], [], []>} : vector<16x16xf32>, vector<16x16xf32>, vector<16x16xf32> -> vector<16x16xf32>
    %cst_66 = arith.constant 2.500000e-01 : f32
    %208 = vector.broadcast %cst_66 : f32 to vector<16x16xf32>
    %209 = arith.mulf %207, %208 : vector<16x16xf32>
    %cst_67 = arith.constant -1.000000e+30 : f32
    %210 = vector.broadcast %cst_67 : f32 to vector<16x16xf32>
    %211 = arith.select %38, %209, %210 : vector<16x16xi1>, vector<16x16xf32>
    %cst_68 = arith.constant dense<0xFF800000> : vector<16xf32>
    %212 = vector.multi_reduction <maximumf>, %211, %cst_68 [1] : vector<16x16xf32> to vector<16xf32>
    %213 = vector.shape_cast %212 : vector<16xf32> to vector<16x1xf32>
    %214 = vector.broadcast %213 : vector<16x1xf32> to vector<16x16xf32>
    %215 = arith.subf %211, %214 : vector<16x16xf32>
    %216 = math.exp %215 : vector<16x16xf32>
    %cst_69 = arith.constant dense<0.000000e+00> : vector<16xf32>
    %217 = vector.multi_reduction <add>, %216, %cst_69 [1] : vector<16x16xf32> to vector<16xf32>
    %218 = vector.shape_cast %217 : vector<16xf32> to vector<16x1xf32>
    %219 = tpu.reciprocal %218 {approx = true} : vector<16x1xf32> -> vector<16x1xf32>
    %220 = vector.broadcast %219 : vector<16x1xf32> to vector<16x16xf32>
    %221 = arith.mulf %216, %220 : vector<16x16xf32>
    %222 = vector.extract_strided_slice %183 {offsets = [16, 0], sizes = [16, 16], strides = [1, 1]} : vector<32x16xf32> to vector<16x16xf32>
    %cst_70 = arith.constant dense<0.000000e+00> : vector<16x16xf32>
    %223 = tpu.matmul %221, %222, %cst_70 {dimension_numbers = #tpu.dot_dimension_numbers<[1], [0], [0], [1], [0, 0, 1, 1], [], []>} : vector<16x16xf32>, vector<16x16xf32>, vector<16x16xf32> -> vector<16x16xf32>
    %224 = tpu.concatenate %203, %223 in 0 : vector<16x16xf32>, vector<16x16xf32> -> vector<32x16xf32>
    %225 = vector.extract_strided_slice %35 {offsets = [48, 0], sizes = [16, 64], strides = [1, 1]} : vector<64x64xf32> to vector<16x64xf32>
    %cst_71 = arith.constant dense<0.000000e+00> : vector<32x64xf32>
    %226 = tpu.matmul %224, %225, %cst_71 {dimension_numbers = #tpu.dot_dimension_numbers<[1], [0], [0], [1], [0, 0, 1, 1], [], []>} : vector<32x16xf32>, vector<16x64xf32>, vector<32x64xf32> -> vector<32x64xf32>
    %227 = arith.addf %180, %226 : vector<32x64xf32>
    %228 = arith.addf %3, %227 : vector<32x64xf32>
    %c0_72 = arith.constant 0 : index
    %c0_73 = arith.constant 0 : index
    %c0_74 = arith.constant 0 : index
    %229 = vector.load %arg8[%c0_72, %c0_73, %c0_74] : memref<1x1x64xf32, #tpu.memory_space<vmem>>, vector<1x1x64xf32>
    %230 = vector.shape_cast %229 : vector<1x1x64xf32> to vector<1x64xf32>
    %231 = vector.broadcast %230 : vector<1x64xf32> to vector<32x64xf32>
    %232 = arith.addf %228, %231 : vector<32x64xf32>
    %c0_75 = arith.constant 0 : index
    %c0_76 = arith.constant 0 : index
    %c0_77 = arith.constant 0 : index
    %233 = vector.load %arg9[%c0_75, %c0_76, %c0_77] : memref<1x1x64xf32, #tpu.memory_space<vmem>>, vector<1x1x64xf32>
    %234 = vector.shape_cast %233 : vector<1x1x64xf32> to vector<1x64xf32>
    %c0_78 = arith.constant 0 : index
    %c0_79 = arith.constant 0 : index
    %c0_80 = arith.constant 0 : index
    %235 = vector.load %arg10[%c0_78, %c0_79, %c0_80] : memref<1x1x64xf32, #tpu.memory_space<vmem>>, vector<1x1x64xf32>
    %236 = vector.shape_cast %235 : vector<1x1x64xf32> to vector<1x64xf32>
    %cst_81 = arith.constant dense<0.000000e+00> : vector<32xf32>
    %237 = vector.multi_reduction <add>, %232, %cst_81 [1] : vector<32x64xf32> to vector<32xf32>
    %238 = vector.shape_cast %237 : vector<32xf32> to vector<32x1xf32>
    %cst_82 = arith.constant 6.400000e+01 : f32
    %239 = vector.broadcast %cst_82 : f32 to vector<32x1xf32>
    %240 = arith.divf %238, %239 : vector<32x1xf32>
    %241 = vector.broadcast %240 : vector<32x1xf32> to vector<32x64xf32>
    %242 = arith.subf %232, %241 : vector<32x64xf32>
    %243 = arith.mulf %242, %242 : vector<32x64xf32>
    %cst_83 = arith.constant dense<0.000000e+00> : vector<32xf32>
    %244 = vector.multi_reduction <add>, %243, %cst_83 [1] : vector<32x64xf32> to vector<32xf32>
    %245 = vector.shape_cast %244 : vector<32xf32> to vector<32x1xf32>
    %cst_84 = arith.constant 6.400000e+01 : f32
    %246 = vector.broadcast %cst_84 : f32 to vector<32x1xf32>
    %247 = arith.divf %245, %246 : vector<32x1xf32>
    %cst_85 = arith.constant 9.99999974E-6 : f32
    %248 = vector.broadcast %cst_85 : f32 to vector<32x1xf32>
    %249 = arith.addf %247, %248 : vector<32x1xf32>
    %250 = math.rsqrt %249 : vector<32x1xf32>
    %251 = vector.broadcast %250 : vector<32x1xf32> to vector<32x64xf32>
    %252 = arith.mulf %242, %251 : vector<32x64xf32>
    %253 = vector.broadcast %234 : vector<1x64xf32> to vector<32x64xf32>
    %254 = arith.mulf %252, %253 : vector<32x64xf32>
    %255 = vector.broadcast %236 : vector<1x64xf32> to vector<32x64xf32>
    %256 = arith.addf %254, %255 : vector<32x64xf32>
    %c0_86 = arith.constant 0 : index
    %c0_87 = arith.constant 0 : index
    %c0_88 = arith.constant 0 : index
    %257 = vector.load %arg11[%c0_86, %c0_87, %c0_88] : memref<1x64x256xf32, #tpu.memory_space<vmem>>, vector<1x64x256xf32>
    %258 = vector.shape_cast %257 : vector<1x64x256xf32> to vector<64x256xf32>
    %cst_89 = arith.constant dense<0.000000e+00> : vector<32x256xf32>
    %259 = tpu.matmul %256, %258, %cst_89 {dimension_numbers = #tpu.dot_dimension_numbers<[1], [0], [0], [1], [0, 0, 1, 1], [], []>} : vector<32x64xf32>, vector<64x256xf32>, vector<32x256xf32> -> vector<32x256xf32>
    %c0_90 = arith.constant 0 : index
    %c0_91 = arith.constant 0 : index
    %c0_92 = arith.constant 0 : index
    %260 = vector.load %arg12[%c0_90, %c0_91, %c0_92] : memref<1x1x256xf32, #tpu.memory_space<vmem>>, vector<1x1x256xf32>
    %261 = vector.shape_cast %260 : vector<1x1x256xf32> to vector<1x256xf32>
    %262 = vector.broadcast %261 : vector<1x256xf32> to vector<32x256xf32>
    %263 = arith.addf %259, %262 : vector<32x256xf32>
    %cst_93 = arith.constant 0.000000e+00 : f32
    %264 = vector.broadcast %cst_93 : f32 to vector<32x256xf32>
    %265 = arith.maximumf %263, %264 : vector<32x256xf32>
    %c0_94 = arith.constant 0 : index
    %c0_95 = arith.constant 0 : index
    %c0_96 = arith.constant 0 : index
    %266 = vector.load %arg13[%c0_94, %c0_95, %c0_96] : memref<1x256x64xf32, #tpu.memory_space<vmem>>, vector<1x256x64xf32>
    %267 = vector.shape_cast %266 : vector<1x256x64xf32> to vector<256x64xf32>
    %cst_97 = arith.constant dense<0.000000e+00> : vector<32x64xf32>
    %268 = tpu.matmul %265, %267, %cst_97 {dimension_numbers = #tpu.dot_dimension_numbers<[1], [0], [0], [1], [0, 0, 1, 1], [], []>} : vector<32x256xf32>, vector<256x64xf32>, vector<32x64xf32> -> vector<32x64xf32>
    %c0_98 = arith.constant 0 : index
    %c0_99 = arith.constant 0 : index
    %c0_100 = arith.constant 0 : index
    %269 = vector.load %arg14[%c0_98, %c0_99, %c0_100] : memref<1x1x64xf32, #tpu.memory_space<vmem>>, vector<1x1x64xf32>
    %270 = vector.shape_cast %269 : vector<1x1x64xf32> to vector<1x64xf32>
    %271 = vector.broadcast %270 : vector<1x64xf32> to vector<32x64xf32>
    %272 = arith.addf %268, %271 : vector<32x64xf32>
    %273 = arith.addf %232, %272 : vector<32x64xf32>
    %c0_101 = arith.constant 0 : index
    %c0_102 = arith.constant 0 : index
    %274 = vector.load %arg20[%c0_101, %c0_102] : memref<32x64xf32, #tpu.memory_space<vmem>>, vector<32x64xf32>
    tpu.vector_store %arg20[%c0_101, %c0_102], %273 {strides = array<i32>} : memref<32x64xf32, #tpu.memory_space<vmem>>, vector<32x64xf32>,
    %c1_i32 = arith.constant 1 : i32
    %275 = arith.cmpi eq, %arg0, %c1_i32 : i32
    %276 = arith.extui %275 : i1 to i32
    %c0_i32_103 = arith.constant 0 : i32
    %277 = arith.cmpi ne, %276, %c0_i32_103 : i32
    scf.if %277 {
      %c0_104 = arith.constant 0 : index
      %c0_105 = arith.constant 0 : index
      %278 = vector.load %arg15[%c0_104, %c0_105] : memref<1x64xf32, #tpu.memory_space<vmem>>, vector<1x64xf32>
      %c0_106 = arith.constant 0 : index
      %c0_107 = arith.constant 0 : index
      %279 = vector.load %arg16[%c0_106, %c0_107] : memref<1x64xf32, #tpu.memory_space<vmem>>, vector<1x64xf32>
      %cst_108 = arith.constant dense<0.000000e+00> : vector<32xf32>
      %280 = vector.multi_reduction <add>, %273, %cst_108 [1] : vector<32x64xf32> to vector<32xf32>
      %281 = vector.shape_cast %280 : vector<32xf32> to vector<32x1xf32>
      %cst_109 = arith.constant 6.400000e+01 : f32
      %282 = vector.broadcast %cst_109 : f32 to vector<32x1xf32>
      %283 = arith.divf %281, %282 : vector<32x1xf32>
      %284 = vector.broadcast %283 : vector<32x1xf32> to vector<32x64xf32>
      %285 = arith.subf %273, %284 : vector<32x64xf32>
      %286 = arith.mulf %285, %285 : vector<32x64xf32>
      %cst_110 = arith.constant dense<0.000000e+00> : vector<32xf32>
      %287 = vector.multi_reduction <add>, %286, %cst_110 [1] : vector<32x64xf32> to vector<32xf32>
      %288 = vector.shape_cast %287 : vector<32xf32> to vector<32x1xf32>
      %cst_111 = arith.constant 6.400000e+01 : f32
      %289 = vector.broadcast %cst_111 : f32 to vector<32x1xf32>
      %290 = arith.divf %288, %289 : vector<32x1xf32>
      %cst_112 = arith.constant 9.99999974E-6 : f32
      %291 = vector.broadcast %cst_112 : f32 to vector<32x1xf32>
      %292 = arith.addf %290, %291 : vector<32x1xf32>
      %293 = math.rsqrt %292 : vector<32x1xf32>
      %294 = vector.broadcast %293 : vector<32x1xf32> to vector<32x64xf32>
      %295 = arith.mulf %285, %294 : vector<32x64xf32>
      %296 = vector.broadcast %278 : vector<1x64xf32> to vector<32x64xf32>
      %297 = arith.mulf %295, %296 : vector<32x64xf32>
      %298 = vector.broadcast %279 : vector<1x64xf32> to vector<32x64xf32>
      %299 = arith.addf %297, %298 : vector<32x64xf32>
      %c0_113 = arith.constant 0 : index
      %c0_114 = arith.constant 0 : index
      %300 = vector.load %arg17[%c0_113, %c0_114] : memref<64x128xf32, #tpu.memory_space<vmem>>, vector<64x128xf32>
      %cst_115 = arith.constant dense<0.000000e+00> : vector<32x128xf32>
      %301 = tpu.matmul %299, %300, %cst_115 {dimension_numbers = #tpu.dot_dimension_numbers<[1], [0], [0], [1], [0, 0, 1, 1], [], []>} : vector<32x64xf32>, vector<64x128xf32>, vector<32x128xf32> -> vector<32x128xf32>
      %c0_116 = arith.constant 0 : index
      %c0_117 = arith.constant 0 : index
      %302 = vector.load %arg18[%c0_116, %c0_117] : memref<1x128xf32, #tpu.memory_space<vmem>>, vector<1x128xf32>
      %303 = vector.broadcast %302 : vector<1x128xf32> to vector<32x128xf32>
      %304 = arith.addf %301, %303 : vector<32x128xf32>
      %c0_118 = arith.constant 0 : index
      %c0_119 = arith.constant 0 : index
      %305 = vector.load %arg19[%c0_118, %c0_119] : memref<32x128xf32, #tpu.memory_space<vmem>>, vector<32x128xf32>
      tpu.vector_store %arg19[%c0_118, %c0_119], %304 {strides = array<i32>} : memref<32x128xf32, #tpu.memory_space<vmem>>, vector<32x128xf32>,
    } else {
    }
    return
  }
  func.func @transform_0(%arg0: i32) -> (i32, i32) {
    %c0_i32 = arith.constant 0 : i32
    %c0_i32_0 = arith.constant 0 : i32
    %c0_i32_1 = arith.constant 0 : i32
    return %c0_i32, %c0_i32_0 : i32, i32
  }
  func.func @transform_1(%arg0: i32) -> (i32, i32) {
    %c0_i32 = arith.constant 0 : i32
    %c0_i32_0 = arith.constant 0 : i32
    %c0_i32_1 = arith.constant 0 : i32
    return %c0_i32, %c0_i32_0 : i32, i32
  }
  func.func @transform_2(%arg0: i32) -> (i32, i32) {
    %c0_i32 = arith.constant 0 : i32
    %c0_i32_0 = arith.constant 0 : i32
    %c0_i32_1 = arith.constant 0 : i32
    return %c0_i32, %c0_i32_0 : i32, i32
  }
  func.func @transform_3(%arg0: i32) -> (i32, i32, i32) {
    %c0_i32 = arith.constant 0 : i32
    %c0_i32_0 = arith.constant 0 : i32
    %c0_i32_1 = arith.constant 0 : i32
    return %arg0, %c0_i32, %c0_i32_0 : i32, i32, i32
  }
  func.func @transform_4(%arg0: i32) -> (i32, i32, i32) {
    %c0_i32 = arith.constant 0 : i32
    %c0_i32_0 = arith.constant 0 : i32
    %c0_i32_1 = arith.constant 0 : i32
    return %arg0, %c0_i32, %c0_i32_0 : i32, i32, i32
  }
  func.func @transform_5(%arg0: i32) -> (i32, i32, i32) {
    %c0_i32 = arith.constant 0 : i32
    %c0_i32_0 = arith.constant 0 : i32
    %c0_i32_1 = arith.constant 0 : i32
    return %arg0, %c0_i32, %c0_i32_0 : i32, i32, i32
  }
  func.func @transform_6(%arg0: i32) -> (i32, i32, i32) {
    %c0_i32 = arith.constant 0 : i32
    %c0_i32_0 = arith.constant 0 : i32
    %c0_i32_1 = arith.constant 0 : i32
    return %arg0, %c0_i32, %c0_i32_0 : i32, i32, i32
  }
  func.func @transform_7(%arg0: i32) -> (i32, i32, i32) {
    %c0_i32 = arith.constant 0 : i32
    %c0_i32_0 = arith.constant 0 : i32
    %c0_i32_1 = arith.constant 0 : i32
    return %arg0, %c0_i32, %c0_i32_0 : i32, i32, i32
  }
  func.func @transform_8(%arg0: i32) -> (i32, i32, i32) {
    %c0_i32 = arith.constant 0 : i32
    %c0_i32_0 = arith.constant 0 : i32
    %c0_i32_1 = arith.constant 0 : i32
    return %arg0, %c0_i32, %c0_i32_0 : i32, i32, i32
  }
  func.func @transform_9(%arg0: i32) -> (i32, i32, i32) {
    %c0_i32 = arith.constant 0 : i32
    %c0_i32_0 = arith.constant 0 : i32
    %c0_i32_1 = arith.constant 0 : i32
    return %arg0, %c0_i32, %c0_i32_0 : i32, i32, i32
  }
  func.func @transform_10(%arg0: i32) -> (i32, i32, i32) {
    %c0_i32 = arith.constant 0 : i32
    %c0_i32_0 = arith.constant 0 : i32
    %c0_i32_1 = arith.constant 0 : i32
    return %arg0, %c0_i32, %c0_i32_0 : i32, i32, i32
  }
  func.func @transform_11(%arg0: i32) -> (i32, i32, i32) {
    %c0_i32 = arith.constant 0 : i32
    %c0_i32_0 = arith.constant 0 : i32
    %c0_i32_1 = arith.constant 0 : i32
    return %arg0, %c0_i32, %c0_i32_0 : i32, i32, i32
  }
  func.func @transform_12(%arg0: i32) -> (i32, i32, i32) {
    %c0_i32 = arith.constant 0 : i32
    %c0_i32_0 = arith.constant 0 : i32
    %c0_i32_1 = arith.constant 0 : i32
    return %arg0, %c0_i32, %c0_i32_0 : i32, i32, i32
  }
  func.func @transform_13(%arg0: i32) -> (i32, i32, i32) {
    %c0_i32 = arith.constant 0 : i32
    %c0_i32_0 = arith.constant 0 : i32
    %c0_i32_1 = arith.constant 0 : i32
    return %arg0, %c0_i32, %c0_i32_0 : i32, i32, i32
  }
  func.func @transform_14(%arg0: i32) -> (i32, i32) {
    %c0_i32 = arith.constant 0 : i32
    %c0_i32_0 = arith.constant 0 : i32
    %c0_i32_1 = arith.constant 0 : i32
    return %c0_i32, %c0_i32_0 : i32, i32
  }
  func.func @transform_15(%arg0: i32) -> (i32, i32) {
    %c0_i32 = arith.constant 0 : i32
    %c0_i32_0 = arith.constant 0 : i32
    %c0_i32_1 = arith.constant 0 : i32
    return %c0_i32, %c0_i32_0 : i32, i32
  }
  func.func @transform_16(%arg0: i32) -> (i32, i32) {
    %c0_i32 = arith.constant 0 : i32
    %c0_i32_0 = arith.constant 0 : i32
    %c0_i32_1 = arith.constant 0 : i32
    return %c0_i32, %c0_i32_0 : i32, i32
  }
  func.func @transform_17(%arg0: i32) -> (i32, i32) {
    %c0_i32 = arith.constant 0 : i32
    %c0_i32_0 = arith.constant 0 : i32
    %c0_i32_1 = arith.constant 0 : i32
    return %c0_i32, %c0_i32_0 : i32, i32
  }
  func.func @transform_18(%arg0: i32) -> (i32, i32) {
    %c0_i32 = arith.constant 0 : i32
    %c0_i32_0 = arith.constant 0 : i32
    %c0_i32_1 = arith.constant 0 : i32
    return %c0_i32, %c0_i32_0 : i32, i32
  }
}

</mosaic_0001>

<bundles_post_ra>
// kernel: tpu_custom_call.1
= control target key start
LH: loop header
LB: loop body
LE: loop exit
PB: predicated region body
PF: predicated region fallthrough
CT: control target
= control target key end

     0   :  { %s5295_s0 = inlined_call_operand.vmem [shape: s32[32,1], index: 0, kind: input, shape index: {}]   ;;  %s5296_s1 = inlined_call_operand.vmem [shape: f32[128,64], index: 1, kind: input, shape index: {}]   ;;  %s5297_s2 = inlined_call_operand.vmem [shape: f32[16,64], index: 2, kind: input, shape index: {}]   ;;  %s5298_s3 = inlined_call_operand.vmem [shape: f32[2,1,64], index: 3, kind: input, shape index: {}]   ;;  %s5299_s4 = inlined_call_operand.vmem [shape: f32[2,1,64], index: 4, kind: input, shape index: {}]   ;;  %s5300_s5 = inlined_call_operand.vmem [shape: f32[2,64,192], index: 5, kind: input, shape index: {}]   ;;  %s5301_s6 = inlined_call_operand.vmem [shape: f32[2,64,64], index: 6, kind: input, shape index: {}]   ;;  %s5302_s7 = inlined_call_operand.vmem [shape: f32[2,1,64], index: 7, kind: input, shape index: {}]   ;;  %s5303_s8 = inlined_call_operand.vmem [shape: f32[2,1,64], index: 8, kind: input, shape index: {}]   ;;  %s5304_s9 = inlined_call_operand.vmem [shape: f32[2,1,64], index: 9, kind: input, shape index: {}]   ;;  %s5305_s10 = inlined_call_operand.vmem [shape: f32[2,64,256], index: 10, kind: input, shape index: {}]   ;;  %s5306_s11 = inlined_call_operand.vmem [shape: f32[2,1,256], index: 11, kind: input, shape index: {}]   ;;  %s5307_s12 = inlined_call_operand.vmem [shape: f32[2,256,64], index: 12, kind: input, shape index: {}]   ;;  %s5308_s13 = inlined_call_operand.vmem [shape: f32[2,1,64], index: 13, kind: input, shape index: {}]   ;;  %s5309_s14 = inlined_call_operand.vmem [shape: f32[1,64], index: 14, kind: input, shape index: {}]   ;;  %s5310_s15 = inlined_call_operand.vmem [shape: f32[1,64], index: 15, kind: input, shape index: {}]   ;;  %s5311_s16 = inlined_call_operand.vmem [shape: f32[64,128], index: 16, kind: input, shape index: {}]   ;;  %s5312_s17 = inlined_call_operand.vmem [shape: f32[1,128], index: 17, kind: input, shape index: {}]   ;;  %s5313_s18 = inlined_call_operand.hbm [shape: f32[32,128], index: 18, kind: output, shape index: {}]  }
   0x1   :  { %5318 = sst [smem:[#allocation7_spill]] %s5295_s0 }
   0x2   :  { %5319 = sst [smem:[#allocation8_spill]] %s5296_s1 }
   0x3   :  { %5320 = sst [smem:[#allocation9_spill]] %s5297_s2 }
   0x4   :  { %5321 = sst [smem:[#allocation10_spill]] %s5300_s5 }
   0x5   :  { %5322 = sst [smem:[#allocation11_spill]] %s5301_s6 }
   0x6   :  { %5323 = sst [smem:[#allocation12_spill]] %s5309_s14 }
   0x7   :  { %5324 = sst [smem:[#allocation13_spill]] %s5310_s15 }
   0x8   :  { %5325 = sst [smem:[#allocation14_spill]] %s5312_s17 }
   0x9   :  { %5326 = sst [smem:[#allocation15_spill]] %s5313_s18 }
   0xa   :  { %23 = vsyncpa [#allocation4], 0  ;;  %s4601_s27 = smov 0  }
   0xb LB: > { %5327 = sst [smem:[#allocation6_spill]] %s4491_s27  ;;  %s4607_s28 = sadd.s32 4294967295, %s4491_s27   ;;  %s4491_s27 = sphi %s4601_s27, %s29_s27  }
   0xc   : > { %p3799_p0 = scmp.ge.s32.totalorder %s4491_s27, 1  ;;  %p595_p1 = scmp.lt.s32.totalorder %s4491_s27, 3 }
   0xe   : > { %p596_p2 = pnand %p3799_p0, %p595_p1 }
   0xf   : > { %p681_p3 = scmp.lt.s32.totalorder (!%p596_p2), %s4607_s28, 1  ;;  %s5328_s5 = sld [smem:[#allocation10_spill]] (!%p596_p2) }
  0x10   : > { %599 = sbr.rel (%p596_p2) target bundleno = 5155 (0x1423), region = 92  ;;  %s5329_s6 = sld [smem:[#allocation11_spill]] (!%p596_p2) }
  0x11   : > { %p3809_p4 = scmp.ne.s32.totalorder (!%p596_p2), %s4607_s28, 0 }
  0x15   : > { %s4613_s29 = scalar_select %p681_p3, %s4607_s28, 1 }
  0x16   : > { %s5330_s24 = sld [smem:[#allocation7_spill]] (!%p3809_p4) }
  0x17   : > { %s3908_s22 = sshll.u32 %s4613_s29, 7  ;;  %s3909_s2 = sshll.u32 %s4613_s29, 6 }
  0x18   : > { %s4628_s25 = scalar_lea.vmem %s5328_s5, %s3908_s22  ;;  %s4633_s0 = scalar_lea.vmem %s5329_s6, %s3909_s2 }
  0x19   : > { %s702_s1 = scalar_lea.vmem %s5303_s8, %s4613_s29  ;;  %s4650_s5 = scalar_lea.vmem %s5305_s10, %s3908_s22 }
  0x1a   : > { %s3806_s26 = sshll.u32 %s4613_s29, 1  ;;  %s3911_s2 = sshll.u32 %s4613_s29, 8 }
  0x1b   : > { %s4657_s18 = scalar_lea.vmem %s5306_s11, %s3806_s26  ;;  %s4662_s15 = scalar_lea.vmem %s5307_s12, %s3911_s2 }
  0x1c   : > { %s722_s20 = scalar_lea.vmem %s5308_s13, %s4613_s29  ;;  %726 = sbr.rel (%p3809_p4) target bundleno = 363 (0x16b), region = 96 }
  0x1d   : > { %s5331_s2 = sld [smem:[#allocation8_spill]] (!%p3809_p4) }
  0x1e   : > { %s5332_s23 = sld [smem:[#allocation9_spill]] (!%p3809_p4) }
  0x21   : > { %v728_v0 = vld [vmem:[%s5330_s24 + $0x8] sm:$0xff]  ;;  %v727_v1 = vld [vmem:[%s5330_s24] sm:$0xff]  ;;  %v4493_v2 = vmov 0   ;;  %v730_v5 = vld [vmem:[%s5330_s24 + $0x18] sm:$0xff]  ;;  %v731_v21 = vlaneseq  ;;  %v4494_v25 = vmov 1.0   ;;  %vm860_vm4 = vcmask 523264  }
  0x22   : > { %4364 = vset.pattern.permute.xlu1 %v4493_v2  ;;  %4363 = vset.pattern.permute.xlu0 %v4493_v2  ;;  %v729_v6 = vld [vmem:[%s5330_s24 + $0x10] sm:$0xff] }
  0x23   : > { %v772_v3 = vld [vmem:[%s5331_s2 + $0x78] sm:$0xff]  ;;  %737 = vperm.xlu1 %4364, %v728_v0   ;;  %734 = vperm.xlu0 %4363, %v727_v1   ;;  %v771_v4 = vld [vmem:[%s5331_s2 + $0x70] sm:$0xff]  ;;  %v770_v7 = vld [vmem:[%s5331_s2 + $0x68] sm:$0xff]  ;;  %v732_v22 = vand.u32 127, %v731_v21 }
  0x24   : > { %4076 = vmatprep.subr.mxu0 %v772_v3  ;;  %4288 = vmatprep.subr.mxu1 %v772_v3  ;;  %v769_v8 = vld [vmem:[%s5331_s2 + $0x60] sm:$0xff]  ;;  %v768_v9 = vld [vmem:[%s5331_s2 + $0x58] sm:$0xff]  ;;  %v767_v10 = vld [vmem:[%s5331_s2 + $0x50] sm:$0xff] }
  0x25   : > { %4077 = vmatpush3.msra.mxu0 %v772_v3  ;;  %4304 = vmatpush3.msra.mxu1 %v772_v3  ;;  %v766_v11 = vld [vmem:[%s5331_s2 + $0x48] sm:$0xff]  ;;  %v765_v12 = vld [vmem:[%s5331_s2 + $0x40] sm:$0xff]  ;;  %v764_v13 = vld [vmem:[%s5331_s2 + $0x38] sm:$0xff] }
  0x26   : > { %4078 = vmatprep.subr.mxu0 %v771_v4  ;;  %4289 = vmatprep.subr.mxu1 %v771_v4  ;;  %v763_v14 = vld [vmem:[%s5331_s2 + $0x30] sm:$0xff]  ;;  %v762_v15 = vld [vmem:[%s5331_s2 + $0x28] sm:$0xff]  ;;  %v761_v16 = vld [vmem:[%s5331_s2 + $0x20] sm:$0xff] }
  0x27   : > { %743 = vperm.xlu1 %4364, %v730_v5   ;;  %740 = vperm.xlu0 %4363, %v729_v6   ;;  %v760_v17 = vld [vmem:[%s5331_s2 + $0x18] sm:$0xff]  ;;  %v759_v18 = vld [vmem:[%s5331_s2 + $0x10] sm:$0xff]  ;;  %v758_v19 = vld [vmem:[%s5331_s2 + $0x8] sm:$0xff] }
  0x28   : > { %4079 = vmatpush3.msra.mxu0 %v771_v4  ;;  %4305 = vmatpush3.msra.mxu1 %v771_v4  ;;  %v757_v20 = vld [vmem:[%s5331_s2] sm:$0xff]  ;;  %v774_v28 = vld [vmem:[%s5332_s23 + $0x8] sm:$0xff] }
  0x29   : > { %4080 = vmatprep.subr.mxu0 %v770_v7  ;;  %4290 = vmatprep.subr.mxu1 %v770_v7  ;;  %v773_v30 = vld [vmem:[%s5332_s23] sm:$0xff] }
  0x2a   : > { %4081 = vmatpush3.msra.mxu0 %v770_v7  ;;  %4306 = vmatpush3.msra.mxu1 %v770_v7 }
  0x2b   : > { %4082 = vmatprep.subr.mxu0 %v769_v8  ;;  %4291 = vmatprep.subr.mxu1 %v769_v8 }
  0x2c   : > { %4083 = vmatpush3.msra.mxu0 %v769_v8  ;;  %4307 = vmatpush3.msra.mxu1 %v769_v8 }
  0x2d   : > { %4084 = vmatprep.subr.mxu0 %v768_v9  ;;  %4292 = vmatprep.subr.mxu1 %v768_v9 }
  0x2e   : > { %4085 = vmatpush3.msra.mxu0 %v768_v9  ;;  %4308 = vmatpush3.msra.mxu1 %v768_v9 }
  0x2f   : > { %4086 = vmatprep.subr.mxu0 %v767_v10  ;;  %4293 = vmatprep.subr.mxu1 %v767_v10 }
  0x30   : > { %4087 = vmatpush3.msra.mxu0 %v767_v10  ;;  %4309 = vmatpush3.msra.mxu1 %v767_v10 }
  0x31   : > { %4088 = vmatprep.subr.mxu0 %v766_v11  ;;  %4294 = vmatprep.subr.mxu1 %v766_v11 }
  0x32   : > { %4089 = vmatpush3.msra.mxu0 %v766_v11  ;;  %4310 = vmatpush3.msra.mxu1 %v766_v11 }
  0x33   : > { %4090 = vmatprep.subr.mxu0 %v765_v12  ;;  %4295 = vmatprep.subr.mxu1 %v765_v12 }
  0x34   : > { %4091 = vmatpush3.msra.mxu0 %v765_v12  ;;  %4311 = vmatpush3.msra.mxu1 %v765_v12 }
  0x35   : > { %4092 = vmatprep.subr.mxu0 %v764_v13  ;;  %4296 = vmatprep.subr.mxu1 %v764_v13 }
  0x36   : > { %4093 = vmatpush3.msra.mxu0 %v764_v13  ;;  %4312 = vmatpush3.msra.mxu1 %v764_v13 }
  0x37   : > { %4094 = vmatprep.subr.mxu0 %v763_v14  ;;  %4297 = vmatprep.subr.mxu1 %v763_v14 }
  0x38   : > { %4095 = vmatpush3.msra.mxu0 %v763_v14  ;;  %4313 = vmatpush3.msra.mxu1 %v763_v14 }
  0x39   : > { %4096 = vmatprep.subr.mxu0 %v762_v15  ;;  %4298 = vmatprep.subr.mxu1 %v762_v15 }
  0x3a   : > { %4097 = vmatpush3.msra.mxu0 %v762_v15  ;;  %4314 = vmatpush3.msra.mxu1 %v762_v15 }
  0x3b   : > { %4098 = vmatprep.subr.mxu0 %v761_v16  ;;  %4299 = vmatprep.subr.mxu1 %v761_v16 }
  0x3c   : > { %4099 = vmatpush3.msra.mxu0 %v761_v16  ;;  %4315 = vmatpush3.msra.mxu1 %v761_v16 }
  0x3d   : > { %4100 = vmatprep.subr.mxu0 %v760_v17  ;;  %4300 = vmatprep.subr.mxu1 %v760_v17 }
  0x3e   : > { %4101 = vmatpush3.msra.mxu0 %v760_v17  ;;  %4316 = vmatpush3.msra.mxu1 %v760_v17 }
  0x3f   : > { %4102 = vmatprep.subr.mxu0 %v759_v18  ;;  %4301 = vmatprep.subr.mxu1 %v759_v18 }
  0x40   : > { %4103 = vmatpush3.msra.mxu0 %v759_v18  ;;  %4317 = vmatpush3.msra.mxu1 %v759_v18 }
  0x41   : > { %4104 = vmatprep.subr.mxu0 %v758_v19  ;;  %4302 = vmatprep.subr.mxu1 %v758_v19 }
  0x42   : > { %4105 = vmatpush3.msra.mxu0 %v758_v19  ;;  %4318 = vmatpush3.msra.mxu1 %v758_v19 }
  0x43   : > { %4106 = vmatprep.subr.mxu0 %v757_v20  ;;  %4303 = vmatprep.subr.mxu1 %v757_v20 }
  0x44   : > { %4107 = vmatpush3.msra.mxu0 %v757_v20  ;;  %4319 = vmatpush3.msra.mxu1 %v757_v20 }
  0x9e   : > { %v738_v23 = vpop.permute.xlu1 %737  ;;  %v735_v24 = vpop.permute.xlu0 %734 }
  0x9f   : > { %vm746_vm0 = vcmp.eq.s32.totalorder %v732_v22, %v738_v23  ;;  %vm745_vm1 = vcmp.eq.s32.totalorder %v732_v22, %v735_v24 }
  0xa0   : > { %4108 = vmatprep.mubr.msk.f32.mxu0 %vm745_vm1, %v4494_v25 }
  0xa1   : > { %4109 = vmatmul.mubr.msk.f32.vlgmr.msra.gmra.mxu0 %vm746_vm0, %v4494_v25 }
  0xa2   : > { %v744_v26 = vpop.permute.xlu1 %743  ;;  %v741_v27 = vpop.permute.xlu0 %740 }
  0xa3   : > { %vm748_vm2 = vcmp.eq.s32.totalorder %v732_v22, %v744_v26  ;;  %vm747_vm3 = vcmp.eq.s32.totalorder %v732_v22, %v741_v27 }
  0xa4   : > { %4111 = vmatprep.mubr.msk.f32.mxu1 %vm747_vm3, %v4494_v25 }
  0xa5   : > { %4112 = vmatmul.mubr.msk.f32.vlgmr.msra.gmra.mxu1 %vm748_vm2, %v4494_v25 }
 0x161   : > { %v4110_v29 = vpop.f32.mrf.mxu0 }
 0x162   : > { %v847_v31 = vadd.f32 %v4110_v29, %v774_v28 }
 0x163   : > { %v841_v32 = vpop.f32.mrf.mxu0 }
 0x164   : > { %862 = vst.msk [vmem:[#allocation2 + $0x8] sm:$0xff] %vm860_vm4, %v847_v31  ;;  %v842_v33 = vadd.f32 %v841_v32, %v773_v30 }
 0x165   : > { %v4113_v34 = vpop.f32.mrf.mxu1 }
 0x166   : > { %861 = vst.msk [vmem:[#allocation2] sm:$0xff] %vm860_vm4, %v842_v33  ;;  %v857_v35 = vadd.f32 %v4113_v34, %v774_v28 }
 0x167   : > { %v851_v36 = vpop.f32.mrf.mxu1 }
 0x168   : > { %864 = vst.msk [vmem:[#allocation2 + $0x18] sm:$0xff] %vm860_vm4, %v857_v35  ;;  %v852_v37 = vadd.f32 %v851_v36, %v773_v30 }
 0x16a   : > { %863 = vst.msk [vmem:[#allocation2 + $0x10] sm:$0xff] %vm860_vm4, %v852_v37 }
 0x16b PF: > { %vm871_vm5 = vcmask 523264   ;;  %v866_v39 = vld [vmem:[#allocation2 + $0x8] sm:$0xff]  ;;  %v960_v58 = vld [vmem:[%s4628_s25 + $0x78] sm:$0xff]  ;;  %v959_v59 = vld [vmem:[%s4628_s25 + $0x70] sm:$0xff]  ;;  %v4495_v3 = vmov 0.0   ;;  %s5333_s30 = scalar_lea.vmem %s5298_s3, %s4613_s29  ;;  %s5334_s21 = scalar_lea.vmem %s5299_s4, %s4613_s29  ;;  %vm1083_vm6 = vcmask 130048  }
 0x16c   : > { %v875_v41 = vsel %vm871_vm5, %v866_v39, 0.0  ;;  %989 = vmatprep.subr.mxu0 %v960_v58  ;;  %v958_v60 = vld [vmem:[%s4628_s25 + $0x68] sm:$0xff]  ;;  %v957_v61 = vld [vmem:[%s4628_s25 + $0x60] sm:$0xff]  ;;  %v956_v63 = vld [vmem:[%s4628_s25 + $0x58] sm:$0xff]  ;;  %1037 = vmatprep.mubr.f32.mxu0 %v4495_v3  ;;  %s4496_s22 = smov 64   ;;  %s4497_s14 = smov 48  }
 0x16d   : > { %v865_v38 = vld [vmem:[#allocation2] sm:$0xff]  ;;  %990 = vmatpush1.msra.mxu0 %v959_v59  ;;  %v955_v0 = vld [vmem:[%s4628_s25 + $0x50] sm:$0xff]  ;;  %v954_v2 = vld [vmem:[%s4628_s25 + $0x48] sm:$0xff]  ;;  %s4498_s6 = smov 112   ;;  %s4499_s19 = smov 32  }
 0x16e   : > { %v872_v40 = vsel %vm871_vm5, %v865_v38, 0.0  ;;  %991 = vmatprep.subr.mxu0 %v958_v60  ;;  %v953_v4 = vld [vmem:[%s4628_s25 + $0x40] sm:$0xff]  ;;  %v952_v6 = vld [vmem:[%s4628_s25 + $0x38] sm:$0xff]  ;;  %v951_v7 = vld [vmem:[%s4628_s25 + $0x30] sm:$0xff]  ;;  %s4501_s26 = smov 16   ;;  %s5339_s17 = scalar_lea.vmem %s5302_s7, %s4613_s29 }
 0x16f   : > { %873 = vadd.xlane.f32.xlu0 %v872_v40  ;;  %v868_v53 = vld [vmem:[#allocation2 + $0x18] sm:$0xff]  ;;  %992 = vmatpush1.msra.mxu0 %v957_v61  ;;  %v950_v8 = vld [vmem:[%s4628_s25 + $0x28] sm:$0xff]  ;;  %v949_v9 = vld [vmem:[%s4628_s25 + $0x20] sm:$0xff]  ;;  %p3896_p5 = scmp.ne.s32.totalorder %s4607_s28, 1 }
 0x170   : > { %v881_v55 = vsel %vm871_vm5, %v868_v53, 0.0  ;;  %993 = vmatprep.subr.mxu0 %v956_v63  ;;  %v948_v10 = vld [vmem:[%s4628_s25 + $0x18] sm:$0xff]  ;;  %v947_v11 = vld [vmem:[%s4628_s25 + $0x10] sm:$0xff]  ;;  %v946_v12 = vld [vmem:[%s4628_s25 + $0x8] sm:$0xff] }
 0x171   : > { %v867_v42 = vld [vmem:[#allocation2 + $0x10] sm:$0xff]  ;;  %994 = vmatpush1.msra.mxu0 %v955_v0  ;;  %v945_v13 = vld [vmem:[%s4628_s25] sm:$0xff]  ;;  %s4500_s25 = smov 96  }
 0x172   : > { %v878_v43 = vsel %vm871_vm5, %v867_v42, 0.0  ;;  %995 = vmatprep.subr.mxu0 %v954_v2  ;;  %v3818_v26 = vld [vmem:[%s5333_s30] ss:$0 sm:$0xff]  ;;  %s4502_s30 = smov 80  }
 0x173   : > { %876 = vadd.xlane.f32.xlu0 %v875_v41  ;;  %996 = vmatpush1.msra.mxu0 %v953_v4  ;;  %v3819_v28 = vld [vmem:[%s5334_s21] ss:$0 sm:$0xff] }
 0x174   : > { %997 = vmatprep.subr.mxu0 %v952_v6 }
 0x175   : > { %998 = vmatpush1.msra.mxu0 %v951_v7 }
 0x176   : > { %999 = vmatprep.subr.mxu0 %v950_v8 }
 0x177   : > { %879 = vadd.xlane.f32.xlu0 %v878_v43  ;;  %1000 = vmatpush1.msra.mxu0 %v949_v9 }
 0x178   : > { %1001 = vmatprep.subr.mxu0 %v948_v10 }
 0x179   : > { %1002 = vmatpush1.msra.mxu0 %v947_v11 }
 0x17a   : > { %1003 = vmatprep.subr.mxu0 %v946_v12 }
 0x17b   : > { %1004 = vmatpush1.msra.mxu0 %v945_v13 }
 0x1f8   : > { %v874_v44 = vpop.xlane.xlu0 %873 }
 0x1f9   : > { %v885_v45 = vmul.f32 0.015625, %v874_v44 }
 0x1fb   : > { %v4738_v46 = vsub.f32 %v865_v38, %v885_v45 }
 0x1fc   : > { %v877_v47 = vpop.xlane.xlu0 %876 }
 0x1fd   : > { %v886_v48 = vmul.f32 0.015625, %v877_v47  ;;  %v893_v49 = vmul.f32 %v4738_v46, %v4738_v46 }
 0x1ff   : > { %v4742_v50 = vsub.f32 %v866_v39, %v886_v48  ;;  %v897_v51 = vsel %vm871_vm5, %v893_v49, 0.0 }
 0x200   : > { %898 = vadd.xlane.f32.xlu1 %v897_v51  ;;  %v880_v56 = vpop.xlane.xlu0 %879 }
 0x201   : > { %v894_v52 = vmul.f32 %v4742_v50, %v4742_v50  ;;  %v887_v57 = vmul.f32 0.015625, %v880_v56  ;;  %v1070_v56 = vlaneseq }
 0x203   : > { %v900_v54 = vsel %vm871_vm5, %v894_v52, 0.0  ;;  %v4753_v62 = vsub.f32 %v867_v42, %v887_v57  ;;  %v4820_v58 = vshrl.u32 %v1070_v56, 7  ;;  %v1074_v61 = vand.u32 127, %v1070_v56 }
 0x204   : > { %901 = vadd.xlane.f32.xlu1 %v900_v54 }
 0x205   : > { %v895_v1 = vmul.f32 %v4753_v62, %v4753_v62  ;;  %v1072_v60 = vadd.s32 8, %v4820_v58  ;;  %vm4832_vm8 = vcmp.le.s32.totalorder %v1074_v61, %v4820_v58 }
 0x207   : > { %v903_v5 = vsel %vm871_vm5, %v895_v1, 0.0  ;;  %vm4827_vm7 = vcmp.le.s32.totalorder %v1074_v61, %v1072_v60 }
 0x208   : > { %882 = vadd.xlane.f32.xlu1 %v881_v55  ;;  %904 = vadd.xlane.f32.xlu0 %v903_v5 }
 0x289   : > { %v899_v14 = vpop.xlane.xlu1 %898 }
 0x28a   : > { %v909_v15 = vmul.f32 0.015625, %v899_v14 }
 0x28c   : > { %v913_v16 = vadd.f32 1e-05, %v909_v15 }
 0x28d   : > { %v902_v17 = vpop.xlane.xlu1 %901 }
 0x28e   : > { %4365 = vrsqrt.f32 %v913_v16  ;;  %v910_v18 = vmul.f32 0.015625, %v902_v17 }
 0x290   : > { %v914_v19 = vadd.f32 1e-05, %v910_v18 }
 0x291   : > { %v883_v20 = vpop.xlane.xlu1 %882  ;;  %v905_v33 = vpop.xlane.xlu0 %904 }
 0x292   : > { %4367 = vrsqrt.f32 %v914_v19  ;;  %v888_v21 = vmul.f32 0.015625, %v883_v20  ;;  %v911_v34 = vmul.f32 0.015625, %v905_v33 }
 0x294   : > { %v892_v22 = vsub.f32 %v868_v53, %v888_v21  ;;  %v915_v36 = vadd.f32 1e-05, %v911_v34 }
 0x296   : > { %v896_v23 = vmul.f32 %v892_v22, %v892_v22  ;;  %4369 = vrsqrt.f32 %v915_v36 }
 0x298   : > { %v906_v24 = vsel %vm871_vm5, %v896_v23, 0.0 }
 0x299   : > { %907 = vadd.xlane.f32.xlu1 %v906_v24 }
 0x29b   : > { %v4366_v25 = vpop.eup %4365 }
 0x29c   : > { %v921_v27 = vmul.f32 %v4366_v25, %v4738_v46 }
 0x29e   : > { %v931_v29 = vmul.f32 %v3818_v26, %v921_v27 }
 0x29f   : > { %v4368_v30 = vpop.eup %4367 }
 0x2a0   : > { %v941_v31 = vadd.f32 %v3819_v28, %v931_v29  ;;  %v922_v32 = vmul.f32 %v4368_v30, %v4742_v50 }
 0x2a2   : > { %3820 = vmatmul.mubr.msk.f32.vlgmr.msra.gmra.mxu0 %vm871_vm5, %v941_v31  ;;  %v932_v35 = vmul.f32 %v3818_v26, %v922_v32 }
 0x2a3   : > { %1043 = vmatprep.mubr.f32.mxu0 %v4495_v3  ;;  %v4370_v38 = vpop.eup %4369 }
 0x2a4   : > { %v942_v37 = vadd.f32 %v3819_v28, %v932_v35  ;;  %v923_v39 = vmul.f32 %v4370_v38, %v4753_v62 }
 0x2a6   : > { %3821 = vmatmul.mubr.msk.f32.gmra.mxu0 %vm871_vm5, %v942_v37  ;;  %v933_v40 = vmul.f32 %v3818_v26, %v923_v39 }
 0x2a7   : > { %1049 = vmatprep.mubr.f32.mxu0 %v4495_v3 }
 0x2a8   : > { %v943_v41 = vadd.f32 %v3819_v28, %v933_v40 }
 0x2aa   : > { %3822 = vmatmul.mubr.msk.f32.gmra.mxu0 %vm871_vm5, %v943_v41 }
 0x2ab   : > { %1055 = vmatprep.mubr.f32.mxu0 %v4495_v3 }
 0x322   : > { %v908_v42 = vpop.xlane.xlu1 %907 }
 0x323   : > { %v912_v43 = vmul.f32 0.015625, %v908_v42 }
 0x325   : > { %v916_v44 = vadd.f32 1e-05, %v912_v43 }
 0x327   : > { %4371 = vrsqrt.f32 %v916_v44 }
 0x334   : > { %v4372_v45 = vpop.eup %4371 }
 0x335   : > { %v924_v46 = vmul.f32 %v4372_v45, %v892_v22 }
 0x337   : > { %v934_v47 = vmul.f32 %v3818_v26, %v924_v46 }
 0x339   : > { %v944_v48 = vadd.f32 %v3819_v28, %v934_v47 }
 0x33b   : > { %3823 = vmatmul.mubr.msk.f32.gmra.mxu0 %vm871_vm5, %v944_v48 }
 0x362   : > { %v4792_v49 = vpop.f32.mrf.mxu0 }
 0x363   : > { %1079 = vrot.lane.b32.xlu1 %v4792_v49, %s4496_s22  ;;  %4118 = vmatprep.mubr.msk.f32.mxu0 %vm1083_vm6, %v4792_v49 }
 0x364   : > { %v4798_v50 = vpop.f32.mrf.mxu0 }
 0x366   : > { %v4800_v51 = vpop.f32.mrf.mxu0 }
 0x367   : > { %1081 = vrot.lane.b32.xlu0 %v4800_v51, %s4496_s22 }
 0x368   : > { %v4804_v52 = vpop.f32.mrf.mxu0 }
 0x369   : > { %4121 = vmatprep.subr.mxu1 %v4804_v52 }
 0x36a   : > { %4122 = vmatpush3.msra.mxu1 %v4804_v52  ;;  %v4816_v55 = vpop.f32.mrf.mxu0 }
 0x36b   : > { %4123 = vmatprep.subr.mxu1 %v4798_v50 }
 0x36c   : > { %4124 = vmatpush3.msra.mxu1 %v4798_v50  ;;  %v4818_v57 = vpop.f32.mrf.mxu0 }
 0x3d5   : > { %v1080_v54 = vpop.permute.xlu1 %1079 }
 0x3d9   : > { %v1082_v53 = vpop.permute.xlu0 %1081 }
 0x3da   : > { %4114 = vmatprep.subr.msk.mxu0 %vm1083_vm6, %v1082_v53 }
 0x3db   : > { %4115 = vmatpush3.xpose.msk.msra.mxu0 %vm1083_vm6, %v1082_v53 }
 0x3dc   : > { %4116 = vmatprep.subr.msk.mxu0 %vm1083_vm6, %v1080_v54 }
 0x3df   : > { %4117 = vmatpush3.xpose.msk.msra.mxu0 %vm1083_vm6, %v1080_v54 }
 0x3e2   : > { %4119 = vmatmul.mubr.msk.f32.vlgmr.msra.gmra.mxu0 %vm1083_vm6, %v4800_v51 }
 0x3fb   : > { %v4822_v59 = vpop.f32.mrf.mxu0 }
 0x3fd   : > { %v4825_v62 = vpop.f32.mrf.mxu0 }
 0x4a2   : > { %v4120_v63 = vpop.f32.mrf.mxu0 }
 0x4a3   : > { %v1168_v1 = vmul.f32 0.25, %v4120_v63 }
 0x4a4   : > { %v1158_v2 = vpop.f32.mrf.mxu0 }
 0x4a5   : > { %v1167_v5 = vmul.f32 0.25, %v1158_v2  ;;  %v1170_v6 = vsel %vm4827_vm7, %v1168_v1, -1e+30 }
 0x4a6   : > { %v1174_v7 = vsel %vm1083_vm6, %v1170_v6, -inf }
 0x4a7   : > { %1175 = vmax.xlane.f32.xlu0 %v1174_v7  ;;  %v1169_v8 = vsel %vm4832_vm8, %v1167_v5, -1e+30 }
 0x4a8   : > { %v1171_v9 = vsel %vm1083_vm6, %v1169_v8, -inf }
 0x4a9   : > { %1172 = vmax.xlane.f32.xlu1 %v1171_v9 }
 0x530   : > { %v1176_v10 = vpop.xlane.xlu0 %1175 }
 0x531   : > { %v1178_v11 = vsub.f32 %v1170_v6, %v1176_v10 }
 0x532   : > { %v1173_v12 = vpop.xlane.xlu1 %1172 }
 0x533   : > { %v1181_v13 = vmul.f32 1.442695, %v1178_v11  ;;  %v1177_v14 = vsub.f32 %v1169_v8, %v1173_v12 }
 0x535   : > { %4373 = vpow2.f32 %v1181_v13  ;;  %v1179_v15 = vmul.f32 1.442695, %v1177_v14 }
 0x537   : > { %4375 = vpow2.f32 %v1179_v15 }
 0x542   : > { %v4374_v16 = vpop.eup %4373 }
 0x543   : > { %v1186_v17 = vsel %vm1083_vm6, %v4374_v16, 0.0 }
 0x544   : > { %v4376_v18 = vpop.eup %4375  ;;  %1187 = vadd.xlane.f32.xlu1 %v1186_v17 }
 0x545   : > { %v1183_v19 = vsel %vm1083_vm6, %v4376_v18, 0.0 }
 0x546   : > { %1184 = vadd.xlane.f32.xlu0 %v1183_v19 }
 0x555   : > { %1276 = vrot.lane.b32.xlu1 %v4816_v55, %s4496_s22 }
 0x559   : > { %1476 = vrot.lane.b32.xlu1 %v4800_v51, %s4497_s14 }
 0x55c   : > { %1278 = vrot.lane.b32.xlu0 %v4822_v59, %s4496_s22 }
 0x55d   : > { %1474 = vrot.lane.b32.xlu1 %v4792_v49, %s4497_s14 }
 0x560   : > { %1470 = vrot.lane.b32.xlu0 %v4792_v49, %s4498_s6 }
 0x561   : > { %1472 = vrot.lane.b32.xlu1 %v4800_v51, %s4498_s6 }
 0x5cd   : > { %v1188_v20 = vpop.xlane.xlu1 %1187 }
 0x5ce   : > { %4377 = vrcp.f32 %v1188_v20 }
 0x5cf   : > { %v1185_v21 = vpop.xlane.xlu0 %1184 }
 0x5d0   : > { %4379 = vrcp.f32 %v1185_v21 }
 0x5d1   : > { %v1277_v22 = vpop.permute.xlu1 %1276 }
 0x5d3   : > { %v1279_v23 = vpop.permute.xlu0 %1278 }
 0x5d4   : > { %4128 = vmatprep.subr.msk.mxu1 %vm1083_vm6, %v1279_v23 }
 0x5d5   : > { %v1477_v24 = vpop.permute.xlu1 %1476 }
 0x5d6   : > { %4142 = vmatprep.subr.msk.mxu0 %vm1083_vm6, %v1477_v24 }
 0x5d7   : > { %v1471_v25 = vpop.permute.xlu0 %1470  ;;  %4143 = vmatpush3.xpose.msk.msra.mxu0 %vm1083_vm6, %v1477_v24 }
 0x5d8   : > { %4146 = vmatprep.mubr.msk.f32.mxu0 %vm1083_vm6, %v1471_v25 }
 0x5d9   : > { %v1475_v26 = vpop.permute.xlu1 %1474 }
 0x5da   : > { %4144 = vmatprep.subr.msk.mxu0 %vm1083_vm6, %v1475_v26 }
 0x5db   : > { %4145 = vmatpush3.xpose.msk.msra.mxu0 %vm1083_vm6, %v1475_v26  ;;  %v4378_v27 = vpop.eup %4377 }
 0x5dc   : > { %v1192_v31 = vmul.f32 %v4378_v27, %v4374_v16 }
 0x5dd   : > { %v4380_v28 = vpop.eup %4379  ;;  %v1473_v29 = vpop.permute.xlu1 %1472 }
 0x5de   : > { %4147 = vmatmul.mubr.msk.f32.vlgmr.msra.gmra.mxu0 %vm1083_vm6, %v1473_v29  ;;  %v1191_v30 = vmul.f32 %v4380_v28, %v4376_v18 }
 0x5e0   : > { %4125 = vmatprep.mubr.msk.f32.mxu1 %vm1083_vm6, %v1191_v30 }
 0x5e1   : > { %4126 = vmatmul.mubr.msk.f32.vlgmr.msra.gmra.mxu1 %vm1083_vm6, %v1192_v31 }
 0x5e2   : > { %4129 = vmatpush3.xpose.msk.msra.mxu1 %vm1083_vm6, %v1279_v23  ;;  %4132 = vmatprep.mubr.msk.f32.mxu1 %vm1083_vm6, %v4816_v55 }
 0x5e3   : > { %4130 = vmatprep.subr.msk.mxu1 %vm1083_vm6, %v1277_v22 }
 0x5e6   : > { %4131 = vmatpush3.xpose.msk.msra.mxu1 %vm1083_vm6, %v1277_v22 }
 0x5e7   : > { %4135 = vmatprep.subr.mxu1 %v4825_v62 }
 0x5e9   : > { %4133 = vmatmul.mubr.msk.f32.vlgmr.msra.gmra.mxu1 %vm1083_vm6, %v4822_v59 }
 0x5ea   : > { %4136 = vmatpush3.msra.mxu1 %v4825_v62 }
 0x5eb   : > { %4137 = vmatprep.subr.mxu1 %v4818_v57 }
 0x5ec   : > { %4138 = vmatpush3.msra.mxu1 %v4818_v57 }
 0x69e   : > { %v4148_v33 = vpop.f32.mrf.mxu0 }
 0x69f   : > { %v1562_v45 = vmul.f32 0.25, %v4148_v33 }
 0x6a0   : > { %v1552_v35 = vpop.f32.mrf.mxu0 }
 0x6a1   : > { %v4876_v32 = vpop.f32.mrf.mxu1  ;;  %v1561_v39 = vmul.f32 0.25, %v1552_v35  ;;  %v1564_v48 = vsel %vm4827_vm7, %v1562_v45, -1e+30 }
 0x6a2   : > { %v1568_v53 = vsel %vm1083_vm6, %v1564_v48, -inf }
 0x6a3   : > { %v4878_v34 = vpop.f32.mrf.mxu1  ;;  %v1563_v46 = vsel %vm4832_vm8, %v1561_v39, -1e+30  ;;  %v1062_v39 = vld [vmem:[%s4633_s0] sm:$0xff] }
 0x6a4   : > { %v1565_v47 = vsel %vm1083_vm6, %v1563_v46, -inf }
 0x6a9   : > { %v4134_v36 = vpop.f32.mrf.mxu1 }
 0x6aa   : > { %v1364_v37 = vmul.f32 0.25, %v4134_v36 }
 0x6ab   : > { %v1354_v38 = vpop.f32.mrf.mxu1 }
 0x6ac   : > { %v1363_v40 = vmul.f32 0.25, %v1354_v38  ;;  %v1366_v41 = vsel %vm4827_vm7, %v1364_v37, -1e+30  ;;  %v1063_v37 = vld [vmem:[%s4633_s0 + $0x8] sm:$0xff] }
 0x6ad   : > { %v1370_v42 = vsel %vm1083_vm6, %v1366_v41, -inf }
 0x6ae   : > { %1371 = vmax.xlane.f32.xlu1 %v1370_v42  ;;  %v1365_v43 = vsel %vm4832_vm8, %v1363_v40, -1e+30 }
 0x6af   : > { %v1367_v44 = vsel %vm1083_vm6, %v1365_v43, -inf }
 0x6b0   : > { %1368 = vmax.xlane.f32.xlu0 %v1367_v44 }
 0x6b4   : > { %1566 = vmax.xlane.f32.xlu0 %v1565_v47 }
 0x6b8   : > { %1569 = vmax.xlane.f32.xlu0 %v1568_v53 }
 0x737   : > { %v1372_v60 = vpop.xlane.xlu1 %1371 }
 0x738   : > { %v1374_v1 = vsub.f32 %v1366_v41, %v1372_v60 }
 0x739   : > { %v1369_v54 = vpop.xlane.xlu0 %1368 }
 0x73a   : > { %v1373_v56 = vsub.f32 %v1365_v43, %v1369_v54  ;;  %v1377_v8 = vmul.f32 1.442695, %v1374_v1 }
 0x73c   : > { %v1375_v2 = vmul.f32 1.442695, %v1373_v56 }
 0x73d   : > { %v1567_v61 = vpop.xlane.xlu0 %1566 }
 0x73e   : > { %v1571_v63 = vsub.f32 %v1563_v46, %v1567_v61 }
 0x740   : > { %v1573_v5 = vmul.f32 1.442695, %v1571_v63 }
 0x741   : > { %v1570_v6 = vpop.xlane.xlu0 %1569 }
 0x742   : > { %4381 = vpow2.f32 %v1573_v5  ;;  %v1572_v7 = vsub.f32 %v1564_v48, %v1570_v6 }
 0x743   : > { %4383 = vpow2.f32 %v1375_v2 }
 0x744   : > { %v1575_v9 = vmul.f32 1.442695, %v1572_v7 }
 0x746   : > { %4385 = vpow2.f32 %v1575_v9 }
 0x747   : > { %4387 = vpow2.f32 %v1377_v8 }
 0x74f   : > { %v4382_v10 = vpop.eup %4381 }
 0x750   : > { %v1577_v11 = vsel %vm1083_vm6, %v4382_v10, 0.0  ;;  %v4384_v12 = vpop.eup %4383 }
 0x751   : > { %1578 = vadd.xlane.f32.xlu0 %v1577_v11  ;;  %v1379_v14 = vsel %vm1083_vm6, %v4384_v12, 0.0 }
 0x753   : > { %v4386_v13 = vpop.eup %4385 }
 0x754   : > { %v1580_v15 = vsel %vm1083_vm6, %v4386_v13, 0.0  ;;  %v4388_v16 = vpop.eup %4387 }
 0x755   : > { %1380 = vadd.xlane.f32.xlu0 %v1379_v14  ;;  %1581 = vadd.xlane.f32.xlu1 %v1580_v15  ;;  %v1382_v17 = vsel %vm1083_vm6, %v4388_v16, 0.0 }
 0x759   : > { %1383 = vadd.xlane.f32.xlu1 %v1382_v17 }
 0x76a   : > { %1589 = vrot.lane.b32.xlu1 %v4798_v50, %s4498_s6 }
 0x76b   : > { %1591 = vrot.lane.b32.xlu0 %v4804_v52, %s4498_s6 }
 0x76e   : > { %1682 = vrot.lane.b32.xlu1 %v4822_v59, %s4497_s14 }
 0x76f   : > { %1676 = vrot.lane.b32.xlu0 %v4816_v55, %s4498_s6 }
 0x772   : > { %1680 = vrot.lane.b32.xlu1 %v4816_v55, %s4497_s14 }
 0x776   : > { %1678 = vrot.lane.b32.xlu1 %v4822_v59, %s4498_s6 }
 0x7da   : > { %v1579_v18 = vpop.xlane.xlu0 %1578 }
 0x7de   : > { %v1381_v19 = vpop.xlane.xlu0 %1380  ;;  %v1582_v20 = vpop.xlane.xlu1 %1581 }
 0x7df   : > { %4389 = vrcp.f32 %v1381_v19 }
 0x7e0   : > { %4391 = vrcp.f32 %v1579_v18 }
 0x7e2   : > { %v1592_v21 = vpop.permute.xlu0 %1591  ;;  %v1384_v22 = vpop.xlane.xlu1 %1383 }
 0x7e3   : > { %4393 = vrcp.f32 %v1384_v22  ;;  %4149 = vmatprep.subr.mxu1 %v1592_v21 }
 0x7e4   : > { %4395 = vrcp.f32 %v1582_v20 }
 0x7e6   : > { %v1590_v24 = vpop.permute.xlu1 %1589  ;;  %v1677_v35 = vpop.permute.xlu0 %1676 }
 0x7ea   : > { %v1683_v30 = vpop.permute.xlu1 %1682 }
 0x7ec   : > { %v4390_v23 = vpop.eup %4389 }
 0x7ed   : > { %v1387_v25 = vmul.f32 %v4390_v23, %v4384_v12  ;;  %v4392_v26 = vpop.eup %4391  ;;  %v1065_v12 = vld [vmem:[%s4633_s0 + $0x18] sm:$0xff] }
 0x7ee   : > { %v1585_v31 = vmul.f32 %v4392_v26, %v4382_v10  ;;  %v1681_v36 = vpop.permute.xlu1 %1680 }
 0x7ef   : > { %4139 = vmatprep.mubr.msk.f32.mxu1 %vm1083_vm6, %v1387_v25 }
 0x7f0   : > { %v4394_v27 = vpop.eup %4393 }
 0x7f1   : > { %v1388_v28 = vmul.f32 %v4394_v27, %v4388_v16  ;;  %v4396_v29 = vpop.eup %4395 }
 0x7f2   : > { %v1586_v33 = vmul.f32 %v4396_v29, %v4386_v13  ;;  %v1679_v38 = vpop.permute.xlu1 %1678 }
 0x7f3   : > { %4140 = vmatmul.mubr.msk.f32.vlgmr.msra.gmra.mxu1 %vm1083_vm6, %v1388_v28 }
 0x7f4   : > { %4150 = vmatpush3.msra.mxu1 %v1592_v21  ;;  %4153 = vmatprep.mubr.msk.f32.mxu1 %vm1083_vm6, %v1585_v31 }
 0x7f5   : > { %4151 = vmatprep.subr.mxu1 %v1590_v24 }
 0x7f6   : > { %4152 = vmatpush3.msra.mxu1 %v1590_v24 }
 0x7f7   : > { %4156 = vmatprep.subr.msk.mxu1 %vm1083_vm6, %v1683_v30  ;;  %4154 = vmatmul.mubr.msk.f32.vlgmr.msra.gmra.mxu1 %vm1083_vm6, %v1586_v33 }
 0x7f8   : > { %4157 = vmatpush3.xpose.msk.msra.mxu1 %vm1083_vm6, %v1683_v30  ;;  %4160 = vmatprep.mubr.msk.f32.mxu1 %vm1083_vm6, %v1677_v35 }
 0x7f9   : > { %4158 = vmatprep.subr.msk.mxu1 %vm1083_vm6, %v1681_v36 }
 0x7fc   : > { %4159 = vmatpush3.xpose.msk.msra.mxu1 %vm1083_vm6, %v1681_v36 }
 0x7fd   : > { %4180 = vmatprep.subr.mxu1 %v1063_v37 }
 0x7ff   : > { %4161 = vmatmul.mubr.msk.f32.vlgmr.msra.gmra.mxu1 %vm1083_vm6, %v1679_v38 }
 0x800   : > { %4181 = vmatpush3.msra.mxu1 %v1063_v37  ;;  %4184 = vmatprep.mubr.msk.f32.mxu1 %vm1083_vm6, %v4878_v34 }
 0x801   : > { %4182 = vmatprep.subr.mxu1 %v1062_v39 }
 0x802   : > { %4183 = vmatpush3.msra.mxu1 %v1062_v39 }
 0x803   : > { %4185 = vmatmul.mubr.msk.f32.vlgmr.msra.gmra.mxu1 %vm1083_vm6, %v4876_v32 }
 0x8b3   : > { %v4141_v40 = vpop.f32.mrf.mxu1 }
 0x8b5   : > { %v1461_v41 = vpop.f32.mrf.mxu1 }
 0x8b6   : > { %4187 = vmatprep.mubr.msk.f32.mxu1 %vm1083_vm6, %v1461_v41 }
 0x8b7   : > { %4188 = vmatmul.mubr.msk.f32.gmra.mxu1 %vm1083_vm6, %v4141_v40  ;;  %v4926_v42 = vpop.f32.mrf.mxu1 }
 0x8b9   : > { %v4928_v43 = vpop.f32.mrf.mxu1 }
 0x8bf   : > { %v4162_v44 = vpop.f32.mrf.mxu1 }
 0x8c0   : > { %v1768_v45 = vmul.f32 0.25, %v4162_v44 }
 0x8c1   : > { %v1758_v46 = vpop.f32.mrf.mxu1 }
 0x8c2   : > { %v1767_v47 = vmul.f32 0.25, %v1758_v46  ;;  %v1770_v34 = vsel %vm4827_vm7, %v1768_v45, -1e+30 }
 0x8c3   : > { %v1774_v48 = vsel %vm1083_vm6, %v1770_v34, -inf }
 0x8c4   : > { %1775 = vmax.xlane.f32.xlu1 %v1774_v48  ;;  %v1769_v32 = vsel %vm4832_vm8, %v1767_v47, -1e+30 }
 0x8c5   : > { %v1771_v53 = vsel %vm1083_vm6, %v1769_v32, -inf }
 0x8c6   : > { %1772 = vmax.xlane.f32.xlu0 %v1771_v53 }
 0x8d5   : > { %1795 = vrot.lane.b32.xlu1 %v4818_v57, %s4498_s6 }
 0x8d9   : > { %2082 = vrot.lane.b32.xlu1 %v4800_v51, %s4499_s19 }
 0x8dd   : > { %2080 = vrot.lane.b32.xlu1 %v4792_v49, %s4499_s19 }
 0x8e1   : > { %2286 = vrot.lane.b32.xlu1 %v4822_v59, %s4499_s19 }
 0x8e5   : > { %2284 = vrot.lane.b32.xlu1 %v4816_v55, %s4499_s19 }
 0x8e9   : > { %2282 = vrot.lane.b32.xlu1 %v4822_v59, %s4500_s25 }
 0x8ed   : > { %2589 = vrot.lane.b32.xlu1 %v4792_v49, %s4501_s26 }
 0x8f1   : > { %2587 = vrot.lane.b32.xlu1 %v4800_v51, %s4502_s30 }
 0x8f5   : > { %2793 = vrot.lane.b32.xlu1 %v4816_v55, %s4501_s26 }
 0x8f9   : > { %2791 = vrot.lane.b32.xlu1 %v4822_v59, %s4502_s30 }
 0x94d   : > { %v1776_v54 = vpop.xlane.xlu1 %1775 }
 0x94e   : > { %v1778_v56 = vsub.f32 %v1770_v34, %v1776_v54 }
 0x94f   : > { %v1773_v60 = vpop.xlane.xlu0 %1772 }
 0x950   : > { %v1781_v61 = vmul.f32 1.442695, %v1778_v56  ;;  %v1777_v63 = vsub.f32 %v1769_v32, %v1773_v60 }
 0x951   : > { %v1796_v11 = vpop.permute.xlu1 %1795 }
 0x952   : > { %4397 = vpow2.f32 %v1781_v61  ;;  %v1779_v1 = vmul.f32 1.442695, %v1777_v63 }
 0x954   : > { %4399 = vpow2.f32 %v1779_v1 }
 0x955   : > { %v2083_v13 = vpop.permute.xlu1 %2082 }
 0x959   : > { %v2081_v15 = vpop.permute.xlu1 %2080 }
 0x95d   : > { %v2287_v16 = vpop.permute.xlu1 %2286 }
 0x95f   : > { %v4398_v2 = vpop.eup %4397 }
 0x960   : > { %v1786_v5 = vsel %vm1083_vm6, %v4398_v2, 0.0 }
 0x961   : > { %v4400_v6 = vpop.eup %4399  ;;  %1787 = vadd.xlane.f32.xlu0 %v1786_v5  ;;  %v2285_v21 = vpop.permute.xlu1 %2284 }
 0x962   : > { %v1783_v7 = vsel %vm1083_vm6, %v4400_v6, 0.0 }
 0x965   : > { %1784 = vadd.xlane.f32.xlu0 %v1783_v7  ;;  %v2283_v24 = vpop.permute.xlu1 %2282 }
 0x969   : > { %v2590_v26 = vpop.permute.xlu1 %2589 }
 0x96d   : > { %v2588_v28 = vpop.permute.xlu1 %2587 }
 0x971   : > { %v2794_v30 = vpop.permute.xlu1 %2793 }
 0x975   : > { %v2792_v31 = vpop.permute.xlu1 %2791 }
 0x97b   : > { %1797 = vrot.lane.b32.xlu0 %v4825_v62, %s4498_s6  ;;  %s5340_s6 = scalar_lea.vmem %s5304_s9, %s4613_s29 }
 0x97f   : > { %2076 = vrot.lane.b32.xlu0 %v4792_v49, %s4500_s25 }
 0x983   : > { %2078 = vrot.lane.b32.xlu0 %v4800_v51, %s4500_s25 }
 0x987   : > { %2280 = vrot.lane.b32.xlu0 %v4816_v55, %s4500_s25 }
 0x98b   : > { %2591 = vrot.lane.b32.xlu0 %v4800_v51, %s4501_s26 }
 0x98f   : > { %2585 = vrot.lane.b32.xlu0 %v4792_v49, %s4502_s30 }
 0x993   : > { %2795 = vrot.lane.b32.xlu0 %v4822_v59, %s4501_s26 }
 0x997   : > { %2789 = vrot.lane.b32.xlu0 %v4816_v55, %s4502_s30  ;;  %v1064_v55 = vld [vmem:[%s4633_s0 + $0x10] sm:$0xff] }
 0x9ea   : > { %v1788_v8 = vpop.xlane.xlu0 %1787 }
 0x9eb   : > { %4401 = vrcp.f32 %v1788_v8 }
 0x9ee   : > { %v1785_v9 = vpop.xlane.xlu0 %1784 }
 0x9ef   : > { %4403 = vrcp.f32 %v1785_v9 }
 0x9f2   : > { %v1798_v10 = vpop.permute.xlu0 %1797 }
 0x9f3   : > { %4163 = vmatprep.subr.mxu0 %v1798_v10 }
 0x9f4   : > { %4164 = vmatpush3.msra.mxu0 %v1798_v10 }
 0x9f5   : > { %4165 = vmatprep.subr.mxu0 %v1796_v11 }
 0x9f6   : > { %4166 = vmatpush3.msra.mxu0 %v1796_v11  ;;  %v2077_v17 = vpop.permute.xlu0 %2076 }
 0x9f7   : > { %4170 = vmatprep.subr.mxu0 %v1065_v12 }
 0x9f8   : > { %v4402_v51 = vpop.eup %4401 }
 0x9f9   : > { %v1792_v14 = vmul.f32 %v4402_v51, %v4398_v2 }
 0x9fa   : > { %v2079_v18 = vpop.permute.xlu0 %2078 }
 0x9fc   : > { %v4404_v49 = vpop.eup %4403 }
 0x9fd   : > { %v1791_v59 = vmul.f32 %v4404_v49, %v4400_v6 }
 0x9fe   : > { %v2281_v19 = vpop.permute.xlu0 %2280 }
 0x9ff   : > { %4167 = vmatprep.mubr.msk.f32.mxu0 %vm1083_vm6, %v1791_v59 }
 0xa00   : > { %4168 = vmatmul.mubr.msk.f32.vlgmr.msra.gmra.mxu0 %vm1083_vm6, %v1792_v14 }
 0xa01   : > { %4171 = vmatpush3.msra.mxu0 %v1065_v12  ;;  %4174 = vmatprep.mubr.msk.f32.mxu0 %vm1083_vm6, %v4928_v43 }
 0xa02   : > { %4172 = vmatprep.subr.mxu0 %v1064_v55  ;;  %v2592_v23 = vpop.permute.xlu0 %2591 }
 0xa03   : > { %4173 = vmatpush3.msra.mxu0 %v1064_v55 }
 0xa04   : > { %4190 = vmatprep.subr.msk.mxu0 %vm1083_vm6, %v2083_v13  ;;  %4175 = vmatmul.mubr.msk.f32.vlgmr.msra.gmra.mxu0 %vm1083_vm6, %v4926_v42 }
 0xa05   : > { %4191 = vmatpush3.xpose.msk.msra.mxu0 %vm1083_vm6, %v2083_v13 }
 0xa06   : > { %4192 = vmatprep.subr.msk.mxu0 %vm1083_vm6, %v2081_v15  ;;  %v2586_v25 = vpop.permute.xlu0 %2585 }
 0xa09   : > { %4193 = vmatpush3.xpose.msk.msra.mxu0 %vm1083_vm6, %v2081_v15 }
 0xa0a   : > { %4204 = vmatprep.subr.msk.mxu0 %vm1083_vm6, %v2287_v16  ;;  %v2796_v27 = vpop.permute.xlu0 %2795 }
 0xa0e   : > { %v2790_v29 = vpop.permute.xlu0 %2789 }
 0xac0   : > { %v4169_v20 = vpop.f32.mrf.mxu0 }
 0xac2   : > { %v1873_v22 = vpop.f32.mrf.mxu0 }
 0xac3   : > { %4177 = vmatprep.mubr.msk.f32.mxu0 %vm1083_vm6, %v1873_v22 }
 0xac4   : > { %4178 = vmatmul.mubr.msk.f32.gmra.mxu0 %vm1083_vm6, %v4169_v20  ;;  %v5001_v33 = vpop.f32.mrf.mxu0 }
 0xac5   : > { %4194 = vmatprep.mubr.msk.f32.mxu0 %vm1083_vm6, %v2077_v17 }
 0xac6   : > { %v5003_v35 = vpop.f32.mrf.mxu0 }
 0xac8   : > { %4195 = vmatmul.mubr.msk.f32.vlgmr.msra.gmra.mxu0 %vm1083_vm6, %v2079_v18 }
 0xac9   : > { %4205 = vmatpush3.xpose.msk.msra.mxu0 %vm1083_vm6, %v2287_v16  ;;  %4208 = vmatprep.mubr.msk.f32.mxu0 %vm1083_vm6, %v2281_v19 }
 0xaca   : > { %4206 = vmatprep.subr.msk.mxu0 %vm1083_vm6, %v2285_v21 }
 0xacd   : > { %4207 = vmatpush3.xpose.msk.msra.mxu0 %vm1083_vm6, %v2285_v21 }
 0xace   : > { %4228 = vmatprep.subr.msk.mxu0 %vm1083_vm6, %v2592_v23 }
 0xad0   : > { %4209 = vmatmul.mubr.msk.f32.vlgmr.msra.gmra.mxu0 %vm1083_vm6, %v2283_v24 }
 0xad1   : > { %4229 = vmatpush3.xpose.msk.msra.mxu0 %vm1083_vm6, %v2592_v23  ;;  %4232 = vmatprep.mubr.msk.f32.mxu0 %vm1083_vm6, %v2586_v25 }
 0xad2   : > { %4230 = vmatprep.subr.msk.mxu0 %vm1083_vm6, %v2590_v26 }
 0xad5   : > { %4231 = vmatpush3.xpose.msk.msra.mxu0 %vm1083_vm6, %v2590_v26 }
 0xad6   : > { %4242 = vmatprep.subr.msk.mxu0 %vm1083_vm6, %v2796_v27 }
 0xad8   : > { %4233 = vmatmul.mubr.msk.f32.vlgmr.msra.gmra.mxu0 %vm1083_vm6, %v2588_v28 }
 0xad9   : > { %4243 = vmatpush3.xpose.msk.msra.mxu0 %vm1083_vm6, %v2796_v27  ;;  %4246 = vmatprep.mubr.msk.f32.mxu0 %vm1083_vm6, %v2790_v29 }
 0xada   : > { %4244 = vmatprep.subr.msk.mxu0 %vm1083_vm6, %v2794_v30 }
 0xadd   : > { %4245 = vmatpush3.xpose.msk.msra.mxu0 %vm1083_vm6, %v2794_v30 }
 0xae0   : > { %4247 = vmatmul.mubr.msk.f32.vlgmr.msra.gmra.mxu0 %vm1083_vm6, %v2792_v31 }
 0xae1   : > { %3287 = vmatprep.mubr.f32.mxu0 %v4495_v3 }
 0xb84   : > { %v5005_v36 = vpop.f32.mrf.mxu0 }
 0xb86   : > { %v5007_v37 = vpop.f32.mrf.mxu0 }
 0xb88   : > { %v4196_v38 = vpop.f32.mrf.mxu0 }
 0xb89   : > { %v2168_v39 = vmul.f32 0.25, %v4196_v38 }
 0xb8a   : > { %v2158_v40 = vpop.f32.mrf.mxu0 }
 0xb8b   : > { %v2167_v41 = vmul.f32 0.25, %v2158_v40  ;;  %v2170_v42 = vsel %vm4827_vm7, %v2168_v39, -1e+30 }
 0xb8c   : > { %v2174_v43 = vsel %vm1083_vm6, %v2170_v42, -inf }
 0xb8d   : > { %2175 = vmax.xlane.f32.xlu1 %v2174_v43  ;;  %v2169_v44 = vsel %vm4832_vm8, %v2167_v41, -1e+30 }
 0xb8e   : > { %v2171_v45 = vsel %vm1083_vm6, %v2169_v44, -inf }
 0xb8f   : > { %2172 = vmax.xlane.f32.xlu0 %v2171_v45 }
 0xb90   : > { %v4210_v46 = vpop.f32.mrf.mxu0 }
 0xb91   : > { %v2372_v34 = vmul.f32 0.25, %v4210_v46 }
 0xb92   : > { %v2362_v47 = vpop.f32.mrf.mxu0 }
 0xb93   : > { %v2371_v48 = vmul.f32 0.25, %v2362_v47  ;;  %v2374_v54 = vsel %vm4827_vm7, %v2372_v34, -1e+30 }
 0xb94   : > { %v2378_v56 = vsel %vm1083_vm6, %v2374_v54, -inf }
 0xb95   : > { %v2373_v32 = vsel %vm4832_vm8, %v2371_v48, -1e+30 }
 0xb96   : > { %v2375_v53 = vsel %vm1083_vm6, %v2373_v32, -inf }
 0xb97   : > { %2376 = vmax.xlane.f32.xlu0 %v2375_v53 }
 0xb98   : > { %v4234_v16 = vpop.f32.mrf.mxu0 }
 0xb99   : > { %v2677_v27 = vmul.f32 0.25, %v4234_v16  ;;  %v4186_v16 = vpop.f32.mrf.mxu1 }
 0xb9a   : > { %v2667_v17 = vpop.f32.mrf.mxu0 }
 0xb9b   : > { %2379 = vmax.xlane.f32.xlu0 %v2378_v56  ;;  %v2676_v19 = vmul.f32 0.25, %v2667_v17  ;;  %v2679_v30 = vsel %vm4827_vm7, %v2677_v27, -1e+30  ;;  %v5063_v17 = vpop.f32.mrf.mxu1 }
 0xb9c   : > { %v2683_v31 = vsel %vm1083_vm6, %v2679_v30, -inf }
 0xb9d   : > { %v2678_v22 = vsel %vm4832_vm8, %v2676_v19, -1e+30 }
 0xb9e   : > { %v2680_v23 = vsel %vm1083_vm6, %v2678_v22, -inf }
 0xba0   : > { %v4248_v18 = vpop.f32.mrf.mxu0 }
 0xba1   : > { %v2881_v24 = vmul.f32 0.25, %v4248_v18  ;;  %v4189_v18 = vpop.f32.mrf.mxu1 }
 0xba2   : > { %v2871_v20 = vpop.f32.mrf.mxu0 }
 0xba3   : > { %v2880_v21 = vmul.f32 0.25, %v2871_v20  ;;  %v2883_v28 = vsel %vm4827_vm7, %v2881_v24, -1e+30  ;;  %v2067_v19 = vpop.f32.mrf.mxu1 }
 0xba4   : > { %v2887_v29 = vsel %vm1083_vm6, %v2883_v28, -inf }
 0xba5   : > { %v2882_v25 = vsel %vm4832_vm8, %v2880_v21, -1e+30 }
 0xba6   : > { %v2884_v26 = vsel %vm1083_vm6, %v2882_v25, -inf }
 0xc16   : > { %v2176_v60 = vpop.xlane.xlu1 %2175 }
 0xc17   : > { %v2178_v61 = vsub.f32 %v2170_v42, %v2176_v60 }
 0xc18   : > { %v2173_v63 = vpop.xlane.xlu0 %2172 }
 0xc19   : > { %v2181_v1 = vmul.f32 1.442695, %v2178_v61  ;;  %v2177_v2 = vsub.f32 %v2169_v44, %v2173_v63 }
 0xc1b   : > { %4405 = vpow2.f32 %v2181_v1  ;;  %v2179_v5 = vmul.f32 1.442695, %v2177_v2 }
 0xc1d   : > { %4407 = vpow2.f32 %v2179_v5 }
 0xc20   : > { %v2377_v6 = vpop.xlane.xlu0 %2376 }
 0xc21   : > { %v2381_v7 = vsub.f32 %v2373_v32, %v2377_v6 }
 0xc23   : > { %v2383_v8 = vmul.f32 1.442695, %v2381_v7 }
 0xc24   : > { %v2380_v9 = vpop.xlane.xlu0 %2379 }
 0xc25   : > { %4409 = vpow2.f32 %v2383_v8  ;;  %v2382_v10 = vsub.f32 %v2374_v54, %v2380_v9 }
 0xc27   : > { %v2385_v11 = vmul.f32 1.442695, %v2382_v10 }
 0xc28   : > { %v4406_v12 = vpop.eup %4405 }
 0xc29   : > { %4411 = vpow2.f32 %v2385_v11  ;;  %v2186_v51 = vsel %vm1083_vm6, %v4406_v12, 0.0 }
 0xc2a   : > { %v4408_v49 = vpop.eup %4407  ;;  %2187 = vadd.xlane.f32.xlu1 %v2186_v51 }
 0xc2b   : > { %v2183_v13 = vsel %vm1083_vm6, %v4408_v49, 0.0 }
 0xc2c   : > { %2184 = vadd.xlane.f32.xlu0 %v2183_v13  ;;  %v1066_v13 = vld [vmem:[%s4633_s0 + $0x20] sm:$0xff] }
 0xc32   : > { %v4410_v59 = vpop.eup %4409 }
 0xc33   : > { %v2387_v14 = vsel %vm1083_vm6, %v4410_v59, 0.0 }
 0xc34   : > { %2388 = vadd.xlane.f32.xlu0 %v2387_v14 }
 0xc36   : > { %v4412_v55 = vpop.eup %4411 }
 0xc37   : > { %v2390_v15 = vsel %vm1083_vm6, %v4412_v55, 0.0 }
 0xc38   : > { %2391 = vadd.xlane.f32.xlu1 %v2390_v15 }
 0xc49   : > { %2193 = vrot.lane.b32.xlu1 %v4798_v50, %s4500_s25 }
 0xc4a   : > { %2195 = vrot.lane.b32.xlu0 %v4804_v52, %s4500_s25 }
 0xc4d   : > { %2399 = vrot.lane.b32.xlu1 %v4825_v62, %s4500_s25 }
 0xc51   : > { %2397 = vrot.lane.b32.xlu1 %v4818_v57, %s4500_s25  ;;  %s5342_s25 = sld [smem:[#allocation13_spill]] (!%p3896_p5) }
 0xc69   : > { %2681 = vmax.xlane.f32.xlu0 %v2680_v23 }
 0xc6d   : > { %2885 = vmax.xlane.f32.xlu0 %v2884_v26 }
 0xc71   : > { %2888 = vmax.xlane.f32.xlu0 %v2887_v29 }
 0xc75   : > { %2684 = vmax.xlane.f32.xlu1 %v2683_v31 }
 0xcb3   : > { %v2188_v38 = vpop.xlane.xlu1 %2187 }
 0xcb4   : > { %4413 = vrcp.f32 %v2188_v38 }
 0xcb5   : > { %v2185_v4 = vpop.xlane.xlu0 %2184 }
 0xcb6   : > { %4415 = vrcp.f32 %v2185_v4 }
 0xcbd   : > { %v2389_v39 = vpop.xlane.xlu0 %2388 }
 0xcbe   : > { %4417 = vrcp.f32 %v2389_v39 }
 0xcc1   : > { %v2392_v40 = vpop.xlane.xlu1 %2391  ;;  %v2196_v41 = vpop.permute.xlu0 %2195 }
 0xcc2   : > { %v4414_v42 = vpop.eup %4413  ;;  %4419 = vrcp.f32 %v2392_v40  ;;  %4197 = vmatprep.subr.mxu1 %v2196_v41 }
 0xcc3   : > { %v4416_v43 = vpop.eup %4415  ;;  %4198 = vmatpush3.msra.mxu1 %v2196_v41  ;;  %v2192_v0 = vmul.f32 %v4414_v42, %v4406_v12  ;;  %v1067_v12 = vld [vmem:[%s4633_s0 + $0x28] sm:$0xff]  ;;  %v1069_v41 = vld [vmem:[%s4633_s0 + $0x38] sm:$0xff]  ;;  %v1068_v42 = vld [vmem:[%s4633_s0 + $0x30] sm:$0xff]  ;;  %s5343_s0 = sld [smem:[#allocation14_spill]] (!%p3896_p5) }
 0xcc4   : > { %v2191_v44 = vmul.f32 %v4416_v43, %v4408_v49  ;;  %v2063_v43 = vadd.f32 %v4186_v16, %v5001_v33 }
 0xcc5   : > { %v2194_v45 = vpop.permute.xlu1 %2193 }
 0xcc6   : > { %4199 = vmatprep.subr.mxu1 %v2194_v45  ;;  %4201 = vmatprep.mubr.msk.f32.mxu1 %vm1083_vm6, %v2191_v44 }
 0xcc7   : > { %4200 = vmatpush3.msra.mxu1 %v2194_v45 }
 0xcc8   : > { %4202 = vmatmul.mubr.msk.f32.vlgmr.msra.gmra.mxu1 %vm1083_vm6, %v2192_v0 }
 0xcc9   : > { %v2400_v46 = vpop.permute.xlu1 %2399 }
 0xcca   : > { %4211 = vmatprep.subr.mxu1 %v2400_v46 }
 0xccb   : > { %v4418_v47 = vpop.eup %4417  ;;  %4212 = vmatpush3.msra.mxu1 %v2400_v46  ;;  %v2073_v46 = vadd.f32 %v4189_v18, %v5005_v36  ;;  %v2058_v36 = vadd.f32 %v5063_v17, %v5003_v35 }
 0xccc   : > { %v2395_v34 = vmul.f32 %v4418_v47, %v4410_v59 }
 0xccd   : > { %v2398_v48 = vpop.permute.xlu1 %2397 }
 0xcce   : > { %4213 = vmatprep.subr.mxu1 %v2398_v48  ;;  %4215 = vmatprep.mubr.msk.f32.mxu1 %vm1083_vm6, %v2395_v34  ;;  %v2068_v34 = vadd.f32 %v2067_v19, %v5007_v37 }
 0xccf   : > { %v4420_v32 = vpop.eup %4419  ;;  %4214 = vmatpush3.msra.mxu1 %v2398_v48 }
 0xcd0   : > { %v2396_v53 = vmul.f32 %v4420_v32, %v4412_v55  ;;  %4218 = vmatprep.subr.mxu1 %v1067_v12 }
 0xcd2   : > { %4216 = vmatmul.mubr.msk.f32.vlgmr.msra.gmra.mxu1 %vm1083_vm6, %v2396_v53 }
 0xcd3   : > { %4219 = vmatpush3.msra.mxu1 %v1067_v12 }
 0xcd4   : > { %4220 = vmatprep.subr.mxu1 %v1066_v13 }
 0xcd5   : > { %4221 = vmatpush3.msra.mxu1 %v1066_v13 }
 0xcf2   : > { %v2682_v54 = vpop.xlane.xlu0 %2681 }
 0xcf3   : > { %v2686_v56 = vsub.f32 %v2678_v22, %v2682_v54 }
 0xcf5   : > { %v2688_v60 = vmul.f32 1.442695, %v2686_v56 }
 0xcf6   : > { %v2886_v61 = vpop.xlane.xlu0 %2885 }
 0xcf7   : > { %4421 = vpow2.f32 %v2688_v60  ;;  %v2890_v63 = vsub.f32 %v2882_v25, %v2886_v61 }
 0xcf9   : > { %v2892_v1 = vmul.f32 1.442695, %v2890_v63 }
 0xcfa   : > { %v2889_v2 = vpop.xlane.xlu0 %2888 }
 0xcfb   : > { %4423 = vpow2.f32 %v2892_v1  ;;  %v2891_v5 = vsub.f32 %v2883_v28, %v2889_v2  ;;  %v3888_v1 = vld [vmem:[%s5339_s17] ss:$0 sm:$0xff] }
 0xcfd   : > { %v2894_v8 = vmul.f32 1.442695, %v2891_v5  ;;  %v4445_v5 = vld [vmem:[#allocation2 + $0x8] sm:$0xff] }
 0xcfe   : > { %v2685_v6 = vpop.xlane.xlu1 %2684 }
 0xcff   : > { %v2687_v7 = vsub.f32 %v2679_v30, %v2685_v6 }
 0xd01   : > { %v2690_v9 = vmul.f32 1.442695, %v2687_v7 }
 0xd03   : > { %4425 = vpow2.f32 %v2690_v9 }
 0xd04   : > { %v4422_v10 = vpop.eup %4421  ;;  %4427 = vpow2.f32 %v2894_v8 }
 0xd05   : > { %v2692_v11 = vsel %vm1083_vm6, %v4422_v10, 0.0 }
 0xd06   : > { %2693 = vadd.xlane.f32.xlu0 %v2692_v11 }
 0xd08   : > { %v4424_v51 = vpop.eup %4423 }
 0xd09   : > { %v2896_v49 = vsel %vm1083_vm6, %v4424_v51, 0.0 }
 0xd0a   : > { %2897 = vadd.xlane.f32.xlu0 %v2896_v49 }
 0xd10   : > { %v4426_v59 = vpop.eup %4425 }
 0xd11   : > { %v2695_v14 = vsel %vm1083_vm6, %v4426_v59, 0.0  ;;  %v4428_v55 = vpop.eup %4427 }
 0xd12   : > { %2696 = vadd.xlane.f32.xlu1 %v2695_v14  ;;  %v2899_v15 = vsel %vm1083_vm6, %v4428_v55, 0.0 }
 0xd16   : > { %2900 = vadd.xlane.f32.xlu1 %v2899_v15 }
 0xd20   : > { %2704 = vrot.lane.b32.xlu0 %v4804_v52, %s4502_s30 }
 0xd27   : > { %2702 = vrot.lane.b32.xlu1 %v4798_v50, %s4502_s30 }
 0xd2b   : > { %2908 = vrot.lane.b32.xlu1 %v4825_v62, %s4502_s30 }
 0xd2f   : > { %2906 = vrot.lane.b32.xlu1 %v4818_v57, %s4502_s30 }
 0xd88   : > { %v4203_v20 = vpop.f32.mrf.mxu1 }
 0xd8a   : > { %v2271_v21 = vpop.f32.mrf.mxu1 }
 0xd8b   : > { %4222 = vmatprep.mubr.msk.f32.mxu1 %vm1083_vm6, %v2271_v21 }
 0xd8c   : > { %4223 = vmatmul.mubr.msk.f32.vlgmr.msra.gmra.mxu1 %vm1083_vm6, %v4203_v20 }
 0xd8f   : > { %v2694_v52 = vpop.xlane.xlu0 %2693 }
 0xd90   : > { %4429 = vrcp.f32 %v2694_v52 }
 0xd92   : > { %v4217_v50 = vpop.f32.mrf.mxu1 }
 0xd93   : > { %v2898_v22 = vpop.xlane.xlu0 %2897 }
 0xd94   : > { %v2475_v23 = vpop.f32.mrf.mxu1  ;;  %4431 = vrcp.f32 %v2898_v22 }
 0xd95   : > { %4225 = vmatprep.mubr.msk.f32.mxu1 %vm1083_vm6, %v2475_v23 }
 0xd96   : > { %4226 = vmatmul.mubr.msk.f32.gmra.mxu1 %vm1083_vm6, %v4217_v50 }
 0xd97   : > { %v2705_v57 = vpop.permute.xlu0 %2704 }
 0xd98   : > { %4235 = vmatprep.subr.mxu1 %v2705_v57 }
 0xd99   : > { %4236 = vmatpush3.msra.mxu1 %v2705_v57 }
 0xd9b   : > { %v2697_v62 = vpop.xlane.xlu1 %2696 }
 0xd9c   : > { %4433 = vrcp.f32 %v2697_v62 }
 0xd9d   : > { %v4430_v24 = vpop.eup %4429 }
 0xd9e   : > { %v2700_v25 = vmul.f32 %v4430_v24, %v4422_v10  ;;  %v4446_v10 = vld [vmem:[#allocation2] sm:$0xff] }
 0xd9f   : > { %v2901_v26 = vpop.xlane.xlu1 %2900 }
 0xda0   : > { %4435 = vrcp.f32 %v2901_v26  ;;  %4239 = vmatprep.mubr.msk.f32.mxu1 %vm1083_vm6, %v2700_v25 }
 0xda1   : > { %v4432_v29 = vpop.eup %4431 }
 0xda2   : > { %v2904_v4 = vmul.f32 %v4432_v29, %v4424_v51 }
 0xda3   : > { %v2703_v27 = vpop.permute.xlu1 %2702 }
 0xda4   : > { %4237 = vmatprep.subr.mxu1 %v2703_v27 }
 0xda5   : > { %4238 = vmatpush3.msra.mxu1 %v2703_v27 }
 0xda7   : > { %v2909_v28 = vpop.permute.xlu1 %2908 }
 0xda8   : > { %4249 = vmatprep.subr.mxu1 %v2909_v28 }
 0xda9   : > { %v4434_v30 = vpop.eup %4433 }
 0xdaa   : > { %v2701_v31 = vmul.f32 %v4434_v30, %v4426_v59  ;;  %v4447_v59 = vld [vmem:[#allocation2 + $0x18] sm:$0xff] }
 0xdab   : > { %v2907_v38 = vpop.permute.xlu1 %2906 }
 0xdac   : > { %4240 = vmatmul.mubr.msk.f32.vlgmr.msra.gmra.mxu1 %vm1083_vm6, %v2701_v31 }
 0xdad   : > { %v4436_v39 = vpop.eup %4435  ;;  %4250 = vmatpush3.msra.mxu1 %v2909_v28  ;;  %4253 = vmatprep.mubr.msk.f32.mxu1 %vm1083_vm6, %v2904_v4 }
 0xdae   : > { %4251 = vmatprep.subr.mxu1 %v2907_v38  ;;  %v2905_v40 = vmul.f32 %v4436_v39, %v4428_v55  ;;  %v4448_v55 = vld [vmem:[#allocation2 + $0x10] sm:$0xff] }
 0xdaf   : > { %4252 = vmatpush3.msra.mxu1 %v2907_v38 }
 0xdb0   : > { %4254 = vmatmul.mubr.msk.f32.vlgmr.msra.gmra.mxu1 %vm1083_vm6, %v2905_v40  ;;  %4256 = vmatprep.subr.mxu1 %v1069_v41 }
 0xdb1   : > { %4257 = vmatpush3.msra.mxu1 %v1069_v41 }
 0xdb2   : > { %4258 = vmatprep.subr.mxu1 %v1068_v42 }
 0xdb3   : > { %4259 = vmatpush3.msra.mxu1 %v1068_v42  ;;  %v3198_v42 = vld [vmem:[%s4650_s5 + $0x78] sm:$0xff] }
 0xdb4   : > { %3239 = vmatprep.subr.mxu0 %v3198_v42 }
 0xe4c   : > { %v4224_v44 = vpop.f32.mrf.mxu1 }
 0xe4d   : > { %v2582_v45 = vadd.f32 %v4224_v44, %v2063_v43  ;;  %v3197_v43 = vld [vmem:[%s4650_s5 + $0x70] sm:$0xff]  ;;  %v3196_v44 = vld [vmem:[%s4650_s5 + $0x68] sm:$0xff] }
 0xe4e   : > { %v2562_v0 = vpop.f32.mrf.mxu1  ;;  %3240 = vmatpush1.msra.mxu0 %v3197_v43 }
 0xe4f   : > { %v2581_v61 = vadd.f32 %v2562_v0, %v2058_v36  ;;  %3241 = vmatprep.subr.mxu0 %v3196_v44  ;;  %v3194_v0 = vld [vmem:[%s4650_s5 + $0x58] sm:$0xff]  ;;  %v3183_v36 = vld [vmem:[%s4650_s5] sm:$0xff] }
 0xe50   : > { %v3889_v44 = vld [vmem:[%s702_s1] ss:$0 sm:$0xff] }
 0xe56   : > { %v4227_v47 = vpop.f32.mrf.mxu1 }
 0xe57   : > { %v2584_v48 = vadd.f32 %v4227_v47, %v2073_v46  ;;  %v3193_v46 = vld [vmem:[%s4650_s5 + $0x50] sm:$0xff]  ;;  %v3192_v47 = vld [vmem:[%s4650_s5 + $0x48] sm:$0xff] }
 0xe58   : > { %v2572_v32 = vpop.f32.mrf.mxu1 }
 0xe59   : > { %v2583_v53 = vadd.f32 %v2572_v32, %v2068_v34  ;;  %v3191_v34 = vld [vmem:[%s4650_s5 + $0x40] sm:$0xff]  ;;  %v3189_v32 = vld [vmem:[%s4650_s5 + $0x30] sm:$0xff] }
 0xe6c   : > { %v4241_v54 = vpop.f32.mrf.mxu1 }
 0xe6e   : > { %v2780_v56 = vpop.f32.mrf.mxu1 }
 0xe6f   : > { %4260 = vmatprep.mubr.msk.f32.mxu1 %vm1083_vm6, %v2780_v56  ;;  %v3186_v56 = vld [vmem:[%s4650_s5 + $0x18] sm:$0xff] }
 0xe70   : > { %v4255_v60 = vpop.f32.mrf.mxu1  ;;  %4261 = vmatmul.mubr.msk.f32.vlgmr.msra.gmra.mxu1 %vm1083_vm6, %v4241_v54  ;;  %v3187_v54 = vld [vmem:[%s4650_s5 + $0x20] sm:$0xff] }
 0xe72   : > { %v2984_v33 = vpop.f32.mrf.mxu1 }
 0xe73   : > { %4263 = vmatprep.mubr.msk.f32.mxu1 %vm1083_vm6, %v2984_v33  ;;  %v3184_v33 = vld [vmem:[%s4650_s5 + $0x8] sm:$0xff] }
 0xe74   : > { %4264 = vmatmul.mubr.msk.f32.gmra.mxu1 %vm1083_vm6, %v4255_v60  ;;  %v3185_v60 = vld [vmem:[%s4650_s5 + $0x10] sm:$0xff] }
 0xf30   : > { %v4262_v37 = vpop.f32.mrf.mxu1 }
 0xf31   : > { %v3091_v63 = vadd.f32 %v4262_v37, %v2582_v45  ;;  %v3195_v45 = vld [vmem:[%s4650_s5 + $0x60] sm:$0xff]  ;;  %v3351_v37 = vld [vmem:[%s4662_s15 + $0xf8] sm:$0xff] }
 0xf32   : > { %v3071_v2 = vpop.f32.mrf.mxu1  ;;  %3242 = vmatpush1.msra.mxu0 %v3195_v45  ;;  %4020 = vmatprep.subr.mxu1 %v3351_v37  ;;  %v3337_v37 = vld [vmem:[%s4662_s15 + $0x88] sm:$0xff] }
 0xf33   : > { %v3095_v6 = vadd.f32 %v4445_v5, %v3091_v63  ;;  %v3090_v7 = vadd.f32 %v3071_v2, %v2581_v61  ;;  %3243 = vmatprep.subr.mxu0 %v3194_v0  ;;  %v3335_v61 = vld [vmem:[%s4662_s15 + $0x78] sm:$0xff]  ;;  %v3350_v63 = vld [vmem:[%s4662_s15 + $0xf0] sm:$0xff]  ;;  %v3349_v2 = vld [vmem:[%s4662_s15 + $0xe8] sm:$0xff] }
 0xf34   : > { %v4265_v8 = vpop.f32.mrf.mxu1  ;;  %3244 = vmatpush1.msra.mxu0 %v3193_v46  ;;  %4021 = vmatpush3.msra.mxu1 %v3335_v61  ;;  %v3333_v5 = vld [vmem:[%s4662_s15 + $0x68] sm:$0xff]  ;;  %v3890_v46 = vld [vmem:[%s5340_s6] ss:$0 sm:$0xff] }
 0xf35   : > { %v5089_v9 = vadd.f32 %v3888_v1, %v3095_v6  ;;  %v3094_v11 = vadd.f32 %v4446_v10, %v3090_v7  ;;  %v3093_v12 = vadd.f32 %v4265_v8, %v2584_v48  ;;  %3245 = vmatprep.subr.mxu0 %v3192_v47  ;;  %v3190_v48 = vld [vmem:[%s4650_s5 + $0x38] sm:$0xff]  ;;  %4022 = vmatprep.subr.mxu1 %v3350_v63  ;;  %v3348_v6 = vld [vmem:[%s4662_s15 + $0xe0] sm:$0xff]  ;;  %v3321_v61 = vld [vmem:[%s4662_s15 + $0x8] sm:$0xff] }
 0xf36   : > { %v3081_v51 = vpop.f32.mrf.mxu1  ;;  %3246 = vmatpush1.msra.mxu0 %v3191_v34  ;;  %v3332_v7 = vld [vmem:[%s4662_s15 + $0x60] sm:$0xff]  ;;  %v3347_v8 = vld [vmem:[%s4662_s15 + $0xd8] sm:$0xff] }
 0xf37   : > { %v5091_v35 = vadd.f32 %v3888_v1, %v3094_v11  ;;  %v3092_v49 = vadd.f32 %v3081_v51, %v2583_v53  ;;  %v3114_v13 = vsel %vm871_vm5, %v5089_v9, 0.0  ;;  %v3097_v14 = vadd.f32 %v4447_v59, %v3093_v12  ;;  %3247 = vmatprep.subr.mxu0 %v3190_v48  ;;  %v3188_v53 = vld [vmem:[%s4650_s5 + $0x28] sm:$0xff]  ;;  %v3331_v10 = vld [vmem:[%s4662_s15 + $0x58] sm:$0xff]  ;;  %v3346_v11 = vld [vmem:[%s4662_s15 + $0xd0] sm:$0xff] }
 0xf38   : > { %3115 = vadd.xlane.f32.xlu1 %v3114_v13  ;;  %3248 = vmatpush1.msra.mxu0 %v3189_v32  ;;  %v3330_v12 = vld [vmem:[%s4662_s15 + $0x50] sm:$0xff]  ;;  %v3345_v51 = vld [vmem:[%s4662_s15 + $0xc8] sm:$0xff]  ;;  %v3344_v13 = vld [vmem:[%s4662_s15 + $0xc0] sm:$0xff] }
 0xf39   : > { %v3096_v15 = vadd.f32 %v4448_v55, %v3092_v49  ;;  %v3111_v16 = vsel %vm871_vm5, %v5091_v35, 0.0  ;;  %v5099_v18 = vadd.f32 %v3888_v1, %v3097_v14  ;;  %3249 = vmatprep.subr.mxu0 %v3188_v53  ;;  %v3329_v49 = vld [vmem:[%s4662_s15 + $0x48] sm:$0xff]  ;;  %v3328_v59 = vld [vmem:[%s4662_s15 + $0x40] sm:$0xff]  ;;  %v3343_v14 = vld [vmem:[%s4662_s15 + $0xb8] sm:$0xff] }
 0xf3a   : > { %3112 = vadd.xlane.f32.xlu0 %v3111_v16  ;;  %3250 = vmatpush1.msra.mxu0 %v3187_v54  ;;  %v3327_v55 = vld [vmem:[%s4662_s15 + $0x38] sm:$0xff]  ;;  %v3326_v16 = vld [vmem:[%s4662_s15 + $0x30] sm:$0xff]  ;;  %v3336_v63 = vld [vmem:[%s4662_s15 + $0x80] sm:$0xff] }
 0xf3b   : > { %v5097_v17 = vadd.f32 %v3888_v1, %v3096_v15  ;;  %v3120_v20 = vsel %vm871_vm5, %v5099_v18, 0.0  ;;  %3251 = vmatprep.subr.mxu0 %v3186_v56  ;;  %v3334_v1 = vld [vmem:[%s4662_s15 + $0x70] sm:$0xff] }
 0xf3c   : > { %3252 = vmatpush1.msra.mxu0 %v3185_v60  ;;  %4023 = vmatpush3.msra.mxu1 %v3334_v1  ;;  %v3342_v15 = vld [vmem:[%s4662_s15 + $0xb0] sm:$0xff]  ;;  %v3339_v60 = vld [vmem:[%s4662_s15 + $0x98] sm:$0xff]  ;;  %v3203_v1 = vsub.s32 0, %v4820_v58 }
 0xf3d   : > { %v3117_v19 = vsel %vm871_vm5, %v5097_v17, 0.0  ;;  %3253 = vmatprep.subr.mxu0 %v3184_v33  ;;  %4024 = vmatprep.subr.mxu1 %v3349_v2  ;;  %v3338_v33 = vld [vmem:[%s4662_s15 + $0x90] sm:$0xff]  ;;  %v3199_v2 = vld [vmem:[%s4657_s18] sm:$0x3] }
 0xf3e   : > { %3118 = vadd.xlane.f32.xlu0 %v3117_v19  ;;  %3254 = vmatpush1.msra.mxu0 %v3183_v36  ;;  %v3341_v19 = vld [vmem:[%s4662_s15 + $0xa8] sm:$0xff]  ;;  %v3322_v36 = vld [vmem:[%s4662_s15 + $0x10] sm:$0xff] }
 0xf3f   : > { %4025 = vmatpush3.msra.mxu1 %v3333_v5  ;;  %v3207_v5 = vsub.s32 1, %v4820_v58 }
 0xf40   : > { %4026 = vmatprep.subr.mxu1 %v3348_v6  ;;  %v3204_v6 = vrot.slane %v3199_v2, %v3203_v1 }
 0xf41   : > { %4027 = vmatpush3.msra.mxu1 %v3332_v7  ;;  %v3208_v7 = vrot.slane %v3199_v2, %v3207_v5 }
 0xf42   : > { %3121 = vadd.xlane.f32.xlu0 %v3120_v20  ;;  %4028 = vmatprep.subr.mxu1 %v3347_v8  ;;  %v3325_v20 = vld [vmem:[%s4662_s15 + $0x28] sm:$0xff] }
 0xf43   : > { %4029 = vmatpush3.msra.mxu1 %v3331_v10 }
 0xf44   : > { %4030 = vmatprep.subr.mxu1 %v3346_v11 }
 0xf45   : > { %4031 = vmatpush3.msra.mxu1 %v3330_v12 }
 0xf46   : > { %4032 = vmatprep.subr.mxu1 %v3345_v51 }
 0xf47   : > { %4033 = vmatpush3.msra.mxu1 %v3329_v49 }
 0xf48   : > { %4034 = vmatprep.subr.mxu1 %v3344_v13 }
 0xf49   : > { %4035 = vmatpush3.msra.mxu1 %v3328_v59 }
 0xf4a   : > { %4036 = vmatprep.subr.mxu1 %v3343_v14 }
 0xf4b   : > { %4037 = vmatpush3.msra.mxu1 %v3327_v55 }
 0xf4c   : > { %4038 = vmatprep.subr.mxu1 %v3342_v15 }
 0xf4d   : > { %4039 = vmatpush3.msra.mxu1 %v3326_v16 }
 0xf4e   : > { %4040 = vmatprep.subr.mxu1 %v3341_v19 }
 0xf4f   : > { %4041 = vmatpush3.msra.mxu1 %v3325_v20 }
 0xfc1   : > { %v3116_v21 = vpop.xlane.xlu1 %3115 }
 0xfc2   : > { %v3124_v52 = vmul.f32 0.015625, %v3116_v21  ;;  %v3340_v21 = vld [vmem:[%s4662_s15 + $0xa0] sm:$0xff] }
 0xfc3   : > { %v3113_v50 = vpop.xlane.xlu0 %3112  ;;  %4042 = vmatprep.subr.mxu1 %v3340_v21 }
 0xfc4   : > { %v5106_v22 = vsub.f32 %v5089_v9, %v3124_v52  ;;  %v3123_v23 = vmul.f32 0.015625, %v3113_v50  ;;  %v3324_v52 = vld [vmem:[%s4662_s15 + $0x20] sm:$0xff] }
 0xfc5   : > { %4043 = vmatpush3.msra.mxu1 %v3324_v52 }
 0xfc6   : > { %v5109_v57 = vsub.f32 %v5091_v35, %v3123_v23  ;;  %v3132_v62 = vmul.f32 %v5106_v22, %v5106_v22  ;;  %4044 = vmatprep.subr.mxu1 %v3339_v60 }
 0xfc7   : > { %v3119_v24 = vpop.xlane.xlu0 %3118 }
 0xfc8   : > { %v3125_v25 = vmul.f32 0.015625, %v3119_v24  ;;  %v3138_v26 = vsel %vm871_vm5, %v3132_v62, 0.0  ;;  %v3131_v27 = vmul.f32 %v5109_v57, %v5109_v57 }
 0xfc9   : > { %3139 = vadd.xlane.f32.xlu1 %v3138_v26 }
 0xfca   : > { %v5117_v28 = vsub.f32 %v5097_v17, %v3125_v25  ;;  %v3135_v29 = vsel %vm871_vm5, %v3131_v27, 0.0 }
 0xfcb   : > { %3136 = vadd.xlane.f32.xlu0 %v3135_v29  ;;  %v3122_v30 = vpop.xlane.xlu0 %3121 }
 0xfcc   : > { %v3126_v31 = vmul.f32 0.015625, %v3122_v30  ;;  %v3133_v38 = vmul.f32 %v5117_v28, %v5117_v28 }
 0xfce   : > { %v5123_v4 = vsub.f32 %v5099_v18, %v3126_v31  ;;  %v3141_v39 = vsel %vm871_vm5, %v3133_v38, 0.0 }
 0xfcf   : > { %3142 = vadd.xlane.f32.xlu0 %v3141_v39 }
 0xfd0   : > { %v3134_v40 = vmul.f32 %v5123_v4, %v5123_v4 }
 0xfd2   : > { %v3144_v41 = vsel %vm871_vm5, %v3134_v40, 0.0 }
 0xfd3   : > { %3145 = vadd.xlane.f32.xlu1 %v3144_v41 }
0x1052   : > { %v3140_v50 = vpop.xlane.xlu1 %3139 }
0x1053   : > { %v3148_v23 = vmul.f32 0.015625, %v3140_v50 }
0x1054   : > { %v3137_v62 = vpop.xlane.xlu0 %3136 }
0x1055   : > { %v3152_v24 = vadd.f32 1e-05, %v3148_v23  ;;  %v3147_v25 = vmul.f32 0.015625, %v3137_v62 }
0x1057   : > { %4437 = vrsqrt.f32 %v3152_v24  ;;  %v3151_v26 = vadd.f32 1e-05, %v3147_v25 }
0x1058   : > { %v3143_v27 = vpop.xlane.xlu0 %3142 }
0x1059   : > { %4439 = vrsqrt.f32 %v3151_v26  ;;  %v3149_v29 = vmul.f32 0.015625, %v3143_v27 }
0x105b   : > { %v3153_v30 = vadd.f32 1e-05, %v3149_v29 }
0x105c   : > { %v3146_v31 = vpop.xlane.xlu1 %3145 }
0x105d   : > { %4441 = vrsqrt.f32 %v3153_v30  ;;  %v3150_v38 = vmul.f32 0.015625, %v3146_v31  ;;  %v3895_v30 = vld [vmem:[%s722_s20] ss:$0 sm:$0xff] }
0x105f   : > { %v3154_v39 = vadd.f32 1e-05, %v3150_v38 }
0x1061   : > { %4443 = vrsqrt.f32 %v3154_v39 }
0x1064   : > { %v4438_v40 = vpop.eup %4437 }
0x1065   : > { %v3160_v43 = vmul.f32 %v4438_v40, %v5106_v22 }
0x1066   : > { %v4440_v41 = vpop.eup %4439 }
0x1067   : > { %v3159_v42 = vmul.f32 %v4440_v41, %v5109_v57  ;;  %v3170_v34 = vmul.f32 %v3889_v44, %v3160_v43 }
0x1069   : > { %v3169_v45 = vmul.f32 %v3889_v44, %v3159_v42  ;;  %v3180_v57 = vadd.f32 %v3890_v46, %v3170_v34 }
0x106a   : > { %v4442_v0 = vpop.eup %4441 }
0x106b   : > { %v3179_v47 = vadd.f32 %v3890_v46, %v3169_v45  ;;  %v3161_v48 = vmul.f32 %v4442_v0, %v5117_v28 }
0x106d   : > { %3891 = vmatmul.mubr.msk.f32.vlgmr.msra.gmra.mxu0 %vm871_vm5, %v3179_v47  ;;  %v3171_v32 = vmul.f32 %v3889_v44, %v3161_v48 }
0x106e   : > { %v4444_v22 = vpop.eup %4443  ;;  %3293 = vmatprep.mubr.f32.mxu0 %v4495_v3 }
0x106f   : > { %v3162_v53 = vmul.f32 %v4444_v22, %v5123_v4  ;;  %v3181_v54 = vadd.f32 %v3890_v46, %v3171_v32  ;;  %v3323_v4 = vld [vmem:[%s4662_s15 + $0x18] sm:$0xff] }
0x1070   : > { %4045 = vmatpush3.msra.mxu1 %v3323_v4 }
0x1071   : > { %3892 = vmatmul.mubr.msk.f32.gmra.mxu0 %vm871_vm5, %v3180_v57  ;;  %v3172_v28 = vmul.f32 %v3889_v44, %v3162_v53  ;;  %4046 = vmatprep.subr.mxu1 %v3338_v33 }
0x1072   : > { %3299 = vmatprep.mubr.f32.mxu0 %v4495_v3  ;;  %4047 = vmatpush3.msra.mxu1 %v3322_v36 }
0x1073   : > { %v3182_v56 = vadd.f32 %v3890_v46, %v3172_v28  ;;  %4048 = vmatprep.subr.mxu1 %v3337_v37 }
0x1074   : > { %4049 = vmatpush3.msra.mxu1 %v3321_v61 }
0x1075   : > { %3893 = vmatmul.mubr.msk.f32.gmra.mxu0 %vm871_vm5, %v3181_v54  ;;  %4050 = vmatprep.subr.mxu1 %v3336_v63 }
0x1076   : > { %3305 = vmatprep.mubr.f32.mxu0 %v4495_v3  ;;  %v3320_v3 = vld [vmem:[%s4662_s15] sm:$0xff]  ;;  %s5341_s15 = sld [smem:[#allocation12_spill]] (!%p3896_p5) }
0x1077   : > { %4051 = vmatpush3.msra.mxu1 %v3320_v3 }
0x1079   : > { %3894 = vmatmul.mubr.msk.f32.gmra.mxu0 %vm871_vm5, %v3182_v56 }
0x112d   : > { %v3289_v8 = vpop.f32.mrf.mxu0 }
0x112e   : > { %v3290_v10 = vadd.f32 %v3289_v8, %v3204_v6 }
0x112f   : > { %v3291_v11 = vpop.f32.mrf.mxu0 }
0x1130   : > { %v3292_v12 = vadd.f32 %v3291_v11, %v3208_v7  ;;  %v3312_v13 = vmax.f32 %v3290_v10, 0.0 }
0x1131   : > { %v3295_v51 = vpop.f32.mrf.mxu0 }
0x1132   : > { %v3313_v49 = vmax.f32 %v3292_v12, 0.0  ;;  %v3296_v59 = vadd.f32 %v3295_v51, %v3204_v6 }
0x1133   : > { %v3297_v14 = vpop.f32.mrf.mxu0 }
0x1134   : > { %v3298_v55 = vadd.f32 %v3297_v14, %v3208_v7  ;;  %3423 = vmatprep.mubr.f32.mxu1 %v3313_v49  ;;  %v3314_v19 = vmax.f32 %v3296_v59, 0.0 }
0x1135   : > { %v3301_v15 = vpop.f32.mrf.mxu0  ;;  %3424 = vmatmul.mubr.f32.vlgmr.msra.gmra.mxu1 %v3312_v13 }
0x1136   : > { %v3315_v16 = vmax.f32 %v3298_v55, 0.0  ;;  %v3302_v20 = vadd.f32 %v3301_v15, %v3204_v6 }
0x1137   : > { %v3303_v21 = vpop.f32.mrf.mxu0 }
0x1138   : > { %v3304_v58 = vadd.f32 %v3303_v21, %v3208_v7  ;;  %3428 = vmatprep.mubr.f32.mxu1 %v3315_v16  ;;  %v3316_v23 = vmax.f32 %v3302_v20, 0.0 }
0x1139   : > { %v3307_v52 = vpop.f32.mrf.mxu0  ;;  %3429 = vmatmul.mubr.f32.gmra.mxu1 %v3314_v19 }
0x113a   : > { %v3317_v50 = vmax.f32 %v3304_v58, 0.0  ;;  %v3308_v62 = vadd.f32 %v3307_v52, %v3204_v6 }
0x113b   : > { %v3309_v24 = vpop.f32.mrf.mxu0 }
0x113c   : > { %v3310_v25 = vadd.f32 %v3309_v24, %v3208_v7  ;;  %3433 = vmatprep.mubr.f32.mxu1 %v3317_v50  ;;  %v3318_v27 = vmax.f32 %v3308_v62, 0.0 }
0x113d   : > { %3434 = vmatmul.mubr.f32.gmra.mxu1 %v3316_v23 }
0x113e   : > { %v3319_v26 = vmax.f32 %v3310_v25, 0.0 }
0x1140   : > { %3438 = vmatprep.mubr.f32.mxu1 %v3319_v26 }
0x1141   : > { %3439 = vmatmul.mubr.f32.gmra.mxu1 %v3318_v27 }
0x11f5   : > { %v4052_v29 = vpop.f32.mrf.mxu1 }
0x11f7   : > { %v4053_v31 = vpop.f32.mrf.mxu1 }
0x11f8   : > { %v4054_v38 = vadd.f32 %v4053_v31, %v4052_v29 }
0x11f9   : > { %v4055_v39 = vpop.f32.mrf.mxu1 }
0x11fa   : > { %v3426_v40 = vadd.f32 %v4054_v38, %v3895_v30 }
0x11fb   : > { %v4056_v41 = vpop.f32.mrf.mxu1 }
0x11fc   : > { %v3444_v42 = vadd.f32 %v3426_v40, %v5091_v35  ;;  %v4057_v43 = vadd.f32 %v4056_v41, %v4055_v39 }
0x11fd   : > { %v4058_v44 = vpop.f32.mrf.mxu1 }
0x11fe   : > { %3448 = vst.msk [vmem:[#allocation2] sm:$0xff] %vm871_vm5, %v3444_v42  ;;  %v3431_v45 = vadd.f32 %v4057_v43, %v3895_v30 }
0x11ff   : > { %v4059_v0 = vpop.f32.mrf.mxu1 }
0x1200   : > { %v3445_v46 = vadd.f32 %v3431_v45, %v5089_v9  ;;  %v4060_v47 = vadd.f32 %v4059_v0, %v4058_v44 }
0x1201   : > { %v4061_v34 = vpop.f32.mrf.mxu1 }
0x1202   : > { %3449 = vst.msk [vmem:[#allocation2 + $0x8] sm:$0xff] %vm871_vm5, %v3445_v46  ;;  %v3436_v48 = vadd.f32 %v4060_v47, %v3895_v30 }
0x1203   : > { %v4062_v22 = vpop.f32.mrf.mxu1 }
0x1204   : > { %v3446_v57 = vadd.f32 %v3436_v48, %v5097_v17  ;;  %v4063_v32 = vadd.f32 %v4062_v22, %v4061_v34 }
0x1206   : > { %3450 = vst.msk [vmem:[#allocation2 + $0x10] sm:$0xff] %vm871_vm5, %v3446_v57  ;;  %v3441_v35 = vadd.f32 %v4063_v32, %v3895_v30  ;;  %3455 = sbr.rel (%p3896_p5) target bundleno = 5133 (0x140d), region = 100 }
0x1208   : > { %v3447_v53 = vadd.f32 %v3441_v35, %v5099_v18 }
0x120a   : > { %3451 = vst.msk [vmem:[#allocation2 + $0x18] sm:$0xff] %vm871_vm5, %v3447_v53 }
0x120b   : > { %v3458_v9 = vsel %vm871_vm5, %v3444_v42, 0.0  ;;  %v3461_v54 = vsel %vm871_vm5, %v3445_v46, 0.0  ;;  %v3464_v28 = vsel %vm871_vm5, %v3446_v57, 0.0  ;;  %v3467_v17 = vsel %vm871_vm5, %v3447_v53, 0.0  ;;  %v3537_v49 = vld [vmem:[%s5311_s16 + $0x38] sm:$0xff]  ;;  %v3536_v13 = vld [vmem:[%s5311_s16 + $0x30] sm:$0xff] }
0x120c   : > { %3459 = vadd.xlane.f32.xlu0 %v3458_v9  ;;  %3462 = vadd.xlane.f32.xlu1 %v3461_v54  ;;  %v3535_v59 = vld [vmem:[%s5311_s16 + $0x28] sm:$0xff]  ;;  %v3534_v14 = vld [vmem:[%s5311_s16 + $0x20] sm:$0xff]  ;;  %v3533_v55 = vld [vmem:[%s5311_s16 + $0x18] sm:$0xff] }
0x120d   : > { %4266 = vmatprep.subr.mxu0 %v3537_v49  ;;  %4320 = vmatprep.subr.mxu1 %v3537_v49  ;;  %v3532_v15 = vld [vmem:[%s5311_s16 + $0x10] sm:$0xff]  ;;  %v3531_v16 = vld [vmem:[%s5311_s16 + $0x8] sm:$0xff]  ;;  %v3530_v19 = vld [vmem:[%s5311_s16] sm:$0xff] }
0x120e   : > { %4267 = vmatpush3.msra.mxu0 %v3537_v49  ;;  %4328 = vmatpush3.msra.mxu1 %v3537_v49  ;;  %v3897_v31 = vld [vmem:[%s5341_s15] ss:$0 sm:$0xff] }
0x120f   : > { %4268 = vmatprep.subr.mxu0 %v3536_v13  ;;  %4321 = vmatprep.subr.mxu1 %v3536_v13  ;;  %v3898_v39 = vld [vmem:[%s5342_s25] ss:$0 sm:$0xff] }
0x1210   : > { %3465 = vadd.xlane.f32.xlu0 %v3464_v28  ;;  %3468 = vadd.xlane.f32.xlu1 %v3467_v17  ;;  %v3899_v35 = vld [vmem:[%s5343_s0] ss:$0 sm:$0xff] }
0x1211   : > { %4269 = vmatpush3.msra.mxu0 %v3536_v13  ;;  %4329 = vmatpush3.msra.mxu1 %v3536_v13 }
0x1212   : > { %4270 = vmatprep.subr.mxu0 %v3535_v59  ;;  %4322 = vmatprep.subr.mxu1 %v3535_v59 }
0x1213   : > { %4271 = vmatpush3.msra.mxu0 %v3535_v59  ;;  %4330 = vmatpush3.msra.mxu1 %v3535_v59 }
0x1214   : > { %4272 = vmatprep.subr.mxu0 %v3534_v14  ;;  %4323 = vmatprep.subr.mxu1 %v3534_v14 }
0x1215   : > { %4273 = vmatpush3.msra.mxu0 %v3534_v14  ;;  %4331 = vmatpush3.msra.mxu1 %v3534_v14 }
0x1216   : > { %4274 = vmatprep.subr.mxu0 %v3533_v55  ;;  %4324 = vmatprep.subr.mxu1 %v3533_v55 }
0x1217   : > { %4275 = vmatpush3.msra.mxu0 %v3533_v55  ;;  %4332 = vmatpush3.msra.mxu1 %v3533_v55 }
0x1218   : > { %4276 = vmatprep.subr.mxu0 %v3532_v15  ;;  %4325 = vmatprep.subr.mxu1 %v3532_v15 }
0x1219   : > { %4277 = vmatpush3.msra.mxu0 %v3532_v15  ;;  %4333 = vmatpush3.msra.mxu1 %v3532_v15 }
0x121a   : > { %4278 = vmatprep.subr.mxu0 %v3531_v16  ;;  %4326 = vmatprep.subr.mxu1 %v3531_v16 }
0x121b   : > { %4279 = vmatpush3.msra.mxu0 %v3531_v16  ;;  %4334 = vmatpush3.msra.mxu1 %v3531_v16 }
0x121c   : > { %4280 = vmatprep.subr.mxu0 %v3530_v19  ;;  %4327 = vmatprep.subr.mxu1 %v3530_v19 }
0x121d   : > { %4281 = vmatpush3.msra.mxu0 %v3530_v19  ;;  %4335 = vmatpush3.msra.mxu1 %v3530_v19 }
0x1295   : > { %v3460_v56 = vpop.xlane.xlu0 %3459  ;;  %v3463_v60 = vpop.xlane.xlu1 %3462 }
0x1296   : > { %v3470_v18 = vmul.f32 0.015625, %v3460_v56  ;;  %v3471_v4 = vmul.f32 0.015625, %v3463_v60 }
0x1298   : > { %v5219_v33 = vsub.f32 %v3444_v42, %v3470_v18  ;;  %v5221_v36 = vsub.f32 %v3445_v46, %v3471_v4 }
0x1299   : > { %v3466_v37 = vpop.xlane.xlu0 %3465  ;;  %v3469_v61 = vpop.xlane.xlu1 %3468 }
0x129a   : > { %v3472_v63 = vmul.f32 0.015625, %v3466_v37  ;;  %v3473_v3 = vmul.f32 0.015625, %v3469_v61  ;;  %v3478_v1 = vmul.f32 %v5219_v33, %v5219_v33  ;;  %v3479_v2 = vmul.f32 %v5221_v36, %v5221_v36 }
0x129c   : > { %v5227_v5 = vsub.f32 %v3446_v57, %v3472_v63  ;;  %v5229_v6 = vsub.f32 %v3447_v53, %v3473_v3  ;;  %v3482_v7 = vsel %vm871_vm5, %v3478_v1, 0.0  ;;  %v3485_v8 = vsel %vm871_vm5, %v3479_v2, 0.0 }
0x129d   : > { %3483 = vadd.xlane.f32.xlu0 %v3482_v7 }
0x129e   : > { %v3480_v10 = vmul.f32 %v5227_v5, %v5227_v5  ;;  %v3481_v11 = vmul.f32 %v5229_v6, %v5229_v6 }
0x12a0   : > { %v3488_v12 = vsel %vm871_vm5, %v3480_v10, 0.0  ;;  %v3491_v51 = vsel %vm871_vm5, %v3481_v11, 0.0 }
0x12a1   : > { %3486 = vadd.xlane.f32.xlu0 %v3485_v8  ;;  %3489 = vadd.xlane.f32.xlu1 %v3488_v12 }
0x12a5   : > { %3492 = vadd.xlane.f32.xlu1 %v3491_v51 }
0x1326   : > { %v3484_v20 = vpop.xlane.xlu0 %3483 }
0x1327   : > { %v3494_v21 = vmul.f32 0.015625, %v3484_v20 }
0x1329   : > { %v3498_v58 = vadd.f32 1e-05, %v3494_v21 }
0x132a   : > { %v3490_v52 = vpop.xlane.xlu1 %3489  ;;  %v3487_v50 = vpop.xlane.xlu0 %3486 }
0x132b   : > { %4449 = vrsqrt.f32 %v3498_v58  ;;  %v3496_v23 = vmul.f32 0.015625, %v3490_v52  ;;  %v3495_v62 = vmul.f32 0.015625, %v3487_v50 }
0x132d   : > { %v3500_v24 = vadd.f32 1e-05, %v3496_v23  ;;  %v3499_v25 = vadd.f32 1e-05, %v3495_v62 }
0x132e   : > { %v3493_v26 = vpop.xlane.xlu1 %3492 }
0x132f   : > { %4451 = vrsqrt.f32 %v3500_v24  ;;  %v3497_v27 = vmul.f32 0.015625, %v3493_v26 }
0x1330   : > { %4453 = vrsqrt.f32 %v3499_v25 }
0x1331   : > { %v3501_v29 = vadd.f32 1e-05, %v3497_v27 }
0x1333   : > { %4455 = vrsqrt.f32 %v3501_v29 }
0x1338   : > { %v4450_v30 = vpop.eup %4449 }
0x1339   : > { %v3506_v38 = vmul.f32 %v4450_v30, %v5219_v33 }
0x133b   : > { %v3516_v40 = vmul.f32 %v3897_v31, %v3506_v38 }
0x133c   : > { %v4452_v41 = vpop.eup %4451 }
0x133d   : > { %v4454_v42 = vpop.eup %4453  ;;  %v3526_v43 = vadd.f32 %v3898_v39, %v3516_v40  ;;  %v3508_v44 = vmul.f32 %v4452_v41, %v5227_v5 }
0x133e   : > { %v3507_v45 = vmul.f32 %v4454_v42, %v5221_v36 }
0x133f   : > { %4282 = vmatprep.mubr.msk.f32.mxu0 %vm871_vm5, %v3526_v43  ;;  %v3518_v0 = vmul.f32 %v3897_v31, %v3508_v44 }
0x1340   : > { %v4456_v46 = vpop.eup %4455  ;;  %v3517_v47 = vmul.f32 %v3897_v31, %v3507_v45 }
0x1341   : > { %v3528_v34 = vadd.f32 %v3898_v39, %v3518_v0  ;;  %v3509_v48 = vmul.f32 %v4456_v46, %v5229_v6 }
0x1342   : > { %v3527_v22 = vadd.f32 %v3898_v39, %v3517_v47 }
0x1343   : > { %4285 = vmatprep.mubr.msk.f32.mxu1 %vm871_vm5, %v3528_v34  ;;  %v3519_v57 = vmul.f32 %v3897_v31, %v3509_v48 }
0x1344   : > { %4283 = vmatmul.mubr.msk.f32.vlgmr.msra.gmra.mxu0 %vm871_vm5, %v3527_v22 }
0x1345   : > { %v3529_v32 = vadd.f32 %v3898_v39, %v3519_v57 }
0x1347   : > { %4286 = vmatmul.mubr.msk.f32.vlgmr.msra.gmra.mxu1 %vm871_vm5, %v3529_v32 }
0x1404   : > { %v4284_v53 = vpop.f32.mrf.mxu0 }
0x1405   : > { %v3629_v9 = vadd.f32 %v4284_v53, %v3899_v35 }
0x1406   : > { %v3623_v54 = vpop.f32.mrf.mxu0 }
0x1407   : > { %3643 = vst [vmem:[#allocation3 + $0x8] sm:$0xff] %v3629_v9  ;;  %v3624_v28 = vadd.f32 %v3899_v35, %v3623_v54  ;;  %v4287_v17 = vpop.f32.mrf.mxu1 }
0x1408   : > { %v3639_v56 = vadd.f32 %v4287_v17, %v3899_v35 }
0x1409   : > { %3642 = vst [vmem:[#allocation3] sm:$0xff] %v3624_v28  ;;  %v3633_v60 = vpop.f32.mrf.mxu1 }
0x140a   : > { %3645 = vst [vmem:[#allocation3 + $0x18] sm:$0xff] %v3639_v56  ;;  %v3634_v18 = vadd.f32 %v3899_v35, %v3633_v60 }
0x140c   : > { %3644 = vst [vmem:[#allocation3 + $0x10] sm:$0xff] %v3634_v18 }
0x140d PF: > { %p4340_p6 = scmp.eq.s32.totalorder %s4607_s28, 1  ;;  %s4503_s27 = smov [#allocation3]  }
0x140e   : > { %s3652_s17 = sshll.u32 %s4503_s27, 4  ;;  %s3653_s17 = int_to_ptr.vmem [resolvable:$true] %s3652_s17 }
0x140f   : > { %s4457_s5 = scalar_lea.vmem %s3653_s17, 512  ;;  %p4464_p10 = scmp.lt.s32.totalorder %s3653_s17, %s3653_s17 }
0x1410   : > { %p4458_p7 = scmp.ne.s32.totalorder %s3653_s17, %s4457_s5  ;;  %p4465_p11 = scmp.lt.s32.totalorder %s4457_s5, %s4457_s5 }
0x1412   : > { %p4459_p8 = pnand %p4458_p7, %p4340_p6  ;;  %p4466_p12 = por %p4465_p11, %p4464_p10 }
0x1414   : > { %p4460_p9 = pneg %p4459_p8 }
0x1416   : > { %p4467_p13 = pnand %p4466_p12, %p4460_p9 }
0x1418   : > { %4470 = shalt.err (!%p4467_p13)
}
0x1419   : > { %s4504_s21 = smov 128   ;;  %s4505_s22 = smov 8  }
0x141a   : > { %s5344_s1 = sld [smem:[#allocation15_spill]] }
0x1420   : > { %4337 = dma.vmem_to_hbm [thread:$0]  (%p4340_p6), %s3653_s17, 512, %s5344_s1, [#allocation4], %s4504_s21, %s4504_s21, %s4505_s22  }
0x1421   : > { %4486 = dma.done.wait (%p4340_p6), [#allocation4], 512  }
0x1422   : > { %4488 = vsyncadd (%p4340_p6), [#allocation4], 4294966784 }
0x1423 PF: > { %s5345_s18 = sld [smem:[#allocation6_spill]] }
0x1429   : > { %s29_s27 = sadd.s32 1, %s5345_s18  }
0x142a   : > { %p26_p0 = scmp.ge.s32.totalorder %s29_s27, 4  }
0x142c   :  { %28 = sbr.rel (!%p26_p0) target bundleno = 11 (0xb), region = 157 }
0x1431   :  { %3668 = vsyncpa [#allocation4], 1 }
0x1432   :  { %3670 = vsyncpa [#allocation4 + $0x1], 1 }

</bundles_post_ra>
